<compile_context>
chip_gen: v6e
topology: v6e:2x2x1
jax: 0.10.0
libtpu: 0.0.40
codegen_flags: <defaults>
</compile_context>

<pallas_src>
import jax
import jax.numpy as jnp
from jax.experimental import pallas as pl
from jax.experimental.pallas import tpu as pltpu

IN_DIM = 28 * 28      # 784
HID_DIM = 768
OUT_DIM = 10
PAD2 = 64             # padded width for layer-2 logits / softmax (half a vreg)
PACK_W = 2 * PAD2     # 128-lane packed output: [logits_pad | softmax_pad]
NEG_BIG = -1e30       # bias for padded classes -> exp underflows to exactly 0
TILE_B = 1024         # max batch rows per grid step (multiple of 8)


def _mlp_kernel(x_ref, w1_ref, b1_ref, w2_ref, b2_ref,
                packed_ref, h1_ref, relu_ref):
    # Layer 1: (tb, 784) @ (784, 768), bf16 MXU inputs, f32 accumulation + bias.
    x = x_ref[...].astype(jnp.bfloat16)
    h1 = jnp.dot(x, w1_ref[...], preferred_element_type=jnp.float32) + b1_ref[...]
    h1_ref[...] = h1.astype(h1_ref.dtype)

    # ReLU in f32, written straight from vregs (value is already resident).
    r = jnp.maximum(h1, 0.0)
    relu_ref[...] = r.astype(relu_ref.dtype)

    # Layer 2, padded to 64 lanes: (tb, 768) @ (768, 64).
    logits = jnp.dot(r.astype(jnp.bfloat16), w2_ref[...],
                     preferred_element_type=jnp.float32) + b2_ref[...]

    # Numerically-stable softmax. Padded columns carry -1e30 so exp() == 0 and
    # they drop out of the max/sum automatically.  Exact divide (free here:
    # the kernel is HBM-bound with large EUP/VPU slack).
    m = jnp.max(logits, axis=-1, keepdims=True)
    e = jnp.exp(logits - m)
    denom = jnp.sum(e, axis=-1, keepdims=True)
    smax = e / denom

    # Pack both small results into one lane-dense 128-wide output tile.
    packed_ref[:, 0:PAD2] = logits.astype(packed_ref.dtype)
    packed_ref[:, PAD2:PACK_W] = smax.astype(packed_ref.dtype)


def _choose_tile(B):
    """Batch tile: full batch if tiny, else a multiple-of-8 tile giving >=2 grid
    steps (so both v7x TensorCores get work), capped at TILE_B."""
    if B <= 8:
        return B
    half = pl.cdiv(B, 2)
    half = ((half + 7) // 8) * 8
    return min(TILE_B, half)


def mlp_forward(x, w1, b1, w2, b2):
    """x: (B, 1, 28, 28) or (B, 784); torch-layout weights W=(out,in), b=(out,).

    Returns (softmax_out (B,10), [x_flat, h1, relu(h1), logits]) like the
    PyTorch module.
    """
    x_flat = x.reshape(-1, IN_DIM)                 # same as torch .view(-1, 784)
    B = x_flat.shape[0]

    tb = _choose_tile(B)
    grid = (pl.cdiv(B, tb),)

    # Weight prep (one-time cost in real use): transpose to (in, out), cast to
    # bf16 for the MXU, pad layer-2 to 64 lane-dense columns.
    w1_t = w1.T.astype(jnp.bfloat16)                              # (784, 768)
    b1_r = b1.reshape(1, HID_DIM).astype(jnp.float32)             # (1, 768)
    w2_p = jnp.zeros((HID_DIM, PAD2), jnp.bfloat16)
    w2_p = w2_p.at[:, :OUT_DIM].set(w2.T.astype(jnp.bfloat16))    # (768, 64)
    b2_p = jnp.full((1, PAD2), NEG_BIG, jnp.float32)
    b2_p = b2_p.at[:, :OUT_DIM].set(b2.reshape(1, OUT_DIM).astype(jnp.float32))

    out_shapes = (
        jax.ShapeDtypeStruct((B, PACK_W), jnp.float32),    # packed logits|softmax
        jax.ShapeDtypeStruct((B, HID_DIM), jnp.float32),   # layer-1 pre-activation
        jax.ShapeDtypeStruct((B, HID_DIM), jnp.float32),   # relu(h1)
    )

    packed, h1, relu_h1 = pl.pallas_call(
        _mlp_kernel,
        out_shape=out_shapes,
        grid=grid,
        in_specs=[
            pl.BlockSpec((tb, IN_DIM), lambda i: (i, 0)),        # x tile
            pl.BlockSpec((IN_DIM, HID_DIM), lambda i: (0, 0)),   # w1 (resident)
            pl.BlockSpec((1, HID_DIM), lambda i: (0, 0)),        # b1 (resident)
            pl.BlockSpec((HID_DIM, PAD2), lambda i: (0, 0)),     # w2 (resident)
            pl.BlockSpec((1, PAD2), lambda i: (0, 0)),           # b2 (resident)
        ],
        out_specs=(
            pl.BlockSpec((tb, PACK_W), lambda i: (i, 0)),        # packed tile
            pl.BlockSpec((tb, HID_DIM), lambda i: (i, 0)),       # h1 tile
            pl.BlockSpec((tb, HID_DIM), lambda i: (i, 0)),       # relu tile
        ),
        compiler_params=pltpu.CompilerParams(
            dimension_semantics=("parallel",),   # shard batch tiles across TCs (v7x)
            vmem_limit_bytes=48 << 20,
        ),
    )(x_flat, w1_t, b1_r, w2_p, b2_p)

    # Both views come from the single packed array (padded lanes carry -1e30 /
    # 0 and are never consumed un-sliced).
    logits = packed[:, :OUT_DIM]
    softmax_out = packed[:, PAD2:PAD2 + OUT_DIM]
    extract_embedding = [x_flat, h1, relu_h1, logits]
    return softmax_out, extract_embedding


def _reference(x, w1, b1, w2, b2):
    """Pure-JAX reference with the same bf16-input / f32-accumulate matmul precision."""
    x_flat = x.reshape(-1, IN_DIM)
    h1 = jnp.dot(x_flat.astype(jnp.bfloat16), w1.T.astype(jnp.bfloat16),
                 preferred_element_type=jnp.float32) + b1
    r = jnp.maximum(h1, 0.0)
    logits = jnp.dot(r.astype(jnp.bfloat16), w2.T.astype(jnp.bfloat16),
                     preferred_element_type=jnp.float32) + b2
    return jax.nn.softmax(logits, axis=-1), [x_flat, h1, r, logits]


if __name__ == "__main__":
    key = jax.random.PRNGKey(0)
    kx, k1, k2, k3, k4 = jax.random.split(key, 5)

    B = 2
    x = jax.random.normal(kx, (B, 1, 28, 28), dtype=jnp.float32)

    # Deterministic parameter init (torch nn.Linear shapes: W = (out, in), b = (out,))
    w1 = jax.random.normal(k1, (HID_DIM, IN_DIM), dtype=jnp.float32) * 0.02
    b1 = jax.random.normal(k2, (HID_DIM,), dtype=jnp.float32) * 0.02
    w2 = jax.random.normal(k3, (OUT_DIM, HID_DIM), dtype=jnp.float32) * 0.02
    b2 = jax.random.normal(k4, (OUT_DIM,), dtype=jnp.float32) * 0.02

    out, embeds = mlp_forward(x, w1, b1, w2, b2)
    out = jax.block_until_ready(out)
    embeds = [jax.block_until_ready(e) for e in embeds]

    ref_out, ref_embeds = _reference(x, w1, b1, w2, b2)

    assert out.shape == (B, OUT_DIM)
    assert jnp.allclose(out, ref_out, atol=2e-3, rtol=0), "softmax mismatch"
    # Exact-divide softmax: rows should sum to 1.
    assert jnp.allclose(jnp.sum(out, axis=-1), 1.0, atol=1e-5), "softmax rows != 1"
    names = ["x_flat", "h1", "relu", "logits"]
    for name, got, ref in zip(names, embeds, ref_embeds):
        assert got.shape == ref.shape, f"{name} shape mismatch"
        assert jnp.allclose(got, ref, atol=1e-3, rtol=1e-3), f"{name} mismatch"

    print("KERNEL_OK")
</pallas_src>

<mosaic_0001>
module attributes {stable_mosaic.version = 11 : i64} {
  func.func @_mlp_kernel(%arg0: i32, %arg1: memref<2x784xf32, #tpu.memory_space<vmem>>, %arg2: memref<784x768xbf16, #tpu.memory_space<vmem>>, %arg3: memref<1x768xf32, #tpu.memory_space<vmem>>, %arg4: memref<768x64xbf16, #tpu.memory_space<vmem>>, %arg5: memref<1x64xf32, #tpu.memory_space<vmem>>, %arg6: memref<2x128xf32, #tpu.memory_space<vmem>>, %arg7: memref<2x768xf32, #tpu.memory_space<vmem>>, %arg8: memref<2x768xf32, #tpu.memory_space<vmem>>) attributes {dimension_semantics = [#tpu.dimension_semantics<parallel>], iteration_bounds = array<i64: 1>, scalar_prefetch = 0 : i64, scratch_operands = 0 : i64, tpu.core_type = #tpu.core_type<tc>, window_params = [{transform_indices = @transform_0, window_bounds = array<i64: 2, 784>}, {pipeline_mode = #tpu.pipeline_mode<synchronous>, transform_indices = @transform_1, window_bounds = array<i64: 784, 768>}, {pipeline_mode = #tpu.pipeline_mode<synchronous>, transform_indices = @transform_2, window_bounds = array<i64: 1, 768>}, {pipeline_mode = #tpu.pipeline_mode<synchronous>, transform_indices = @transform_3, window_bounds = array<i64: 768, 64>}, {pipeline_mode = #tpu.pipeline_mode<synchronous>, transform_indices = @transform_4, window_bounds = array<i64: 1, 64>}, {transform_indices = @transform_5, window_bounds = array<i64: 2, 128>}, {transform_indices = @transform_6, window_bounds = array<i64: 2, 768>}, {transform_indices = @transform_7, window_bounds = array<i64: 2, 768>}]} {
    %c0 = arith.constant 0 : index
    %c0_0 = arith.constant 0 : index
    %0 = vector.load %arg1[%c0, %c0_0] : memref<2x784xf32, #tpu.memory_space<vmem>>, vector<2x784xf32>
    %1 = arith.truncf %0 : vector<2x784xf32> to vector<2x784xbf16>
    %c0_1 = arith.constant 0 : index
    %c0_2 = arith.constant 0 : index
    %2 = vector.load %arg2[%c0_1, %c0_2] : memref<784x768xbf16, #tpu.memory_space<vmem>>, vector<784x768xbf16>
    %cst = arith.constant dense<0.000000e+00> : vector<2x768xf32>
    %3 = tpu.matmul %1, %2, %cst {dimension_numbers = #tpu.dot_dimension_numbers<[1], [0], [0], [1], [0, 0, 1, 1], [], []>} : vector<2x784xbf16>, vector<784x768xbf16>, vector<2x768xf32> -> vector<2x768xf32>
    %c0_3 = arith.constant 0 : index
    %c0_4 = arith.constant 0 : index
    %4 = vector.load %arg3[%c0_3, %c0_4] : memref<1x768xf32, #tpu.memory_space<vmem>>, vector<1x768xf32>
    %5 = vector.broadcast %4 : vector<1x768xf32> to vector<2x768xf32>
    %6 = arith.addf %3, %5 : vector<2x768xf32>
    %c0_5 = arith.constant 0 : index
    %c0_6 = arith.constant 0 : index
    %7 = vector.load %arg7[%c0_5, %c0_6] : memref<2x768xf32, #tpu.memory_space<vmem>>, vector<2x768xf32>
    tpu.vector_store %arg7[%c0_5, %c0_6], %6 {strides = array<i32>} : memref<2x768xf32, #tpu.memory_space<vmem>>, vector<2x768xf32>,
    %cst_7 = arith.constant 0.000000e+00 : f32
    %8 = vector.broadcast %cst_7 : f32 to vector<2x768xf32>
    %9 = arith.maximumf %6, %8 : vector<2x768xf32>
    %c0_8 = arith.constant 0 : index
    %c0_9 = arith.constant 0 : index
    %10 = vector.load %arg8[%c0_8, %c0_9] : memref<2x768xf32, #tpu.memory_space<vmem>>, vector<2x768xf32>
    tpu.vector_store %arg8[%c0_8, %c0_9], %9 {strides = array<i32>} : memref<2x768xf32, #tpu.memory_space<vmem>>, vector<2x768xf32>,
    %11 = arith.truncf %9 : vector<2x768xf32> to vector<2x768xbf16>
    %c0_10 = arith.constant 0 : index
    %c0_11 = arith.constant 0 : index
    %12 = vector.load %arg4[%c0_10, %c0_11] : memref<768x64xbf16, #tpu.memory_space<vmem>>, vector<768x64xbf16>
    %cst_12 = arith.constant dense<0.000000e+00> : vector<2x64xf32>
    %13 = tpu.matmul %11, %12, %cst_12 {dimension_numbers = #tpu.dot_dimension_numbers<[1], [0], [0], [1], [0, 0, 1, 1], [], []>} : vector<2x768xbf16>, vector<768x64xbf16>, vector<2x64xf32> -> vector<2x64xf32>
    %c0_13 = arith.constant 0 : index
    %c0_14 = arith.constant 0 : index
    %14 = vector.load %arg5[%c0_13, %c0_14] : memref<1x64xf32, #tpu.memory_space<vmem>>, vector<1x64xf32>
    %15 = vector.broadcast %14 : vector<1x64xf32> to vector<2x64xf32>
    %16 = arith.addf %13, %15 : vector<2x64xf32>
    %cst_15 = arith.constant dense<0xFF800000> : vector<2xf32>
    %17 = vector.multi_reduction <maximumf>, %16, %cst_15 [1] : vector<2x64xf32> to vector<2xf32>
    %18 = vector.shape_cast %17 : vector<2xf32> to vector<2x1xf32>
    %19 = vector.broadcast %18 : vector<2x1xf32> to vector<2x64xf32>
    %20 = arith.subf %16, %19 : vector<2x64xf32>
    %21 = math.exp %20 : vector<2x64xf32>
    %cst_16 = arith.constant dense<0.000000e+00> : vector<2xf32>
    %22 = vector.multi_reduction <add>, %21, %cst_16 [1] : vector<2x64xf32> to vector<2xf32>
    %23 = vector.shape_cast %22 : vector<2xf32> to vector<2x1xf32>
    %24 = vector.broadcast %23 : vector<2x1xf32> to vector<2x64xf32>
    %25 = arith.divf %21, %24 : vector<2x64xf32>
    %c0_17 = arith.constant 0 : index
    %c0_18 = arith.constant 0 : index
    %26 = vector.load %arg6[%c0_17, %c0_18] : memref<2x128xf32, #tpu.memory_space<vmem>>, vector<2x64xf32>
    tpu.vector_store %arg6[%c0_17, %c0_18], %16 {strides = array<i32>} : memref<2x128xf32, #tpu.memory_space<vmem>>, vector<2x64xf32>,
    %c0_19 = arith.constant 0 : index
    %c64 = arith.constant 64 : index
    %27 = vector.load %arg6[%c0_19, %c64] : memref<2x128xf32, #tpu.memory_space<vmem>>, vector<2x64xf32>
    tpu.vector_store %arg6[%c0_19, %c64], %25 {strides = array<i32>} : memref<2x128xf32, #tpu.memory_space<vmem>>, vector<2x64xf32>,
    return
  }
  func.func @transform_0(%arg0: i32) -> (i32, i32) {
    %c0_i32 = arith.constant 0 : i32
    %c0_i32_0 = arith.constant 0 : i32
    return %arg0, %c0_i32 : i32, i32
  }
  func.func @transform_1(%arg0: i32) -> (i32, i32) {
    %c0_i32 = arith.constant 0 : i32
    %c0_i32_0 = arith.constant 0 : i32
    %c0_i32_1 = arith.constant 0 : i32
    return %c0_i32, %c0_i32_0 : i32, i32
  }
  func.func @transform_2(%arg0: i32) -> (i32, i32) {
    %c0_i32 = arith.constant 0 : i32
    %c0_i32_0 = arith.constant 0 : i32
    %c0_i32_1 = arith.constant 0 : i32
    return %c0_i32, %c0_i32_0 : i32, i32
  }
  func.func @transform_3(%arg0: i32) -> (i32, i32) {
    %c0_i32 = arith.constant 0 : i32
    %c0_i32_0 = arith.constant 0 : i32
    %c0_i32_1 = arith.constant 0 : i32
    return %c0_i32, %c0_i32_0 : i32, i32
  }
  func.func @transform_4(%arg0: i32) -> (i32, i32) {
    %c0_i32 = arith.constant 0 : i32
    %c0_i32_0 = arith.constant 0 : i32
    %c0_i32_1 = arith.constant 0 : i32
    return %c0_i32, %c0_i32_0 : i32, i32
  }
  func.func @transform_5(%arg0: i32) -> (i32, i32) {
    %c0_i32 = arith.constant 0 : i32
    %c0_i32_0 = arith.constant 0 : i32
    return %arg0, %c0_i32 : i32, i32
  }
  func.func @transform_6(%arg0: i32) -> (i32, i32) {
    %c0_i32 = arith.constant 0 : i32
    %c0_i32_0 = arith.constant 0 : i32
    return %arg0, %c0_i32 : i32, i32
  }
  func.func @transform_7(%arg0: i32) -> (i32, i32) {
    %c0_i32 = arith.constant 0 : i32
    %c0_i32_0 = arith.constant 0 : i32
    return %arg0, %c0_i32 : i32, i32
  }
}

</mosaic_0001>

<bundles_post_ra>
// kernel: tpu_custom_call.1
= control target key start
LH: loop header
LB: loop body
LE: loop exit
PB: predicated region body
PF: predicated region fallthrough
CT: control target
= control target key end

     0   :  { %13 = vsyncpa [#allocation3], 0  ;;  %s4484_s0 = inlined_call_operand.hbm [shape: f32[2,784], index: 0, kind: input, shape index: {}]   ;;  %s4485_s1 = inlined_call_operand.hbm [shape: bf16[784,768], index: 1, kind: input, shape index: {}]   ;;  %s4486_s2 = inlined_call_operand.hbm [shape: f32[1,768], index: 2, kind: input, shape index: {}]   ;;  %s4487_s3 = inlined_call_operand.vmem [shape: bf16[768,64], index: 3, kind: input, shape index: {}]   ;;  %s4488_s4 = inlined_call_operand.hbm [shape: f32[1,64], index: 4, kind: input, shape index: {}]   ;;  %s4489_s5 = inlined_call_operand.hbm [shape: f32[2,128], index: 5, kind: output, shape index: {0}]   ;;  %s4490_s6 = inlined_call_operand.hbm [shape: f32[2,768], index: 6, kind: output, shape index: {1}]   ;;  %s4491_s7 = inlined_call_operand.hbm [shape: f32[2,768], index: 7, kind: output, shape index: {2}]  }
   0x1   :  { %14 = vsyncpa [#allocation6], 0 }
   0x2   :  { %15 = vsyncpa [#allocation9], 0 }
   0x3   :  { %16 = vsyncpa [#allocation4], 0 }
   0x4   :  { %17 = vsyncpa [#allocation12], 0  ;;  %s4145_s24 = smov [#allocation5]  }
   0x5   :  { %s33_s25 = sshll.u32 %s4145_s24, 4  ;;  %s34_s25 = int_to_ptr.vmem [resolvable:$true] %s33_s25 }
   0x6   :  { %s4003_s26 = scalar_lea.vmem %s34_s25, 37632  ;;  %p4008_p1 = scmp.lt.s32.totalorder %s34_s25, %s34_s25 }
   0x7   :  { %p4004_p0 = scmp.ne.s32.totalorder %s34_s25, %s4003_s26  ;;  %p4009_p2 = scmp.lt.s32.totalorder %s4003_s26, %s4003_s26 }
   0x9   :  { %p4010_p3 = por %p4009_p2, %p4008_p1 }
   0xb   :  { %p4011_p4 = pnand %p4010_p3, %p4004_p0 }
   0xd   :  { %4014 = shalt.err (!%p4011_p4)
}
   0xe   :  { %s4146_s27 = smov 384   ;;  %s4147_s28 = smov 24  }
   0xf   :  { %39 = dma.hbm_to_vmem [thread:$0]  %s4485_s1, 37632, %s34_s25, [#allocation6], %s4146_s27, %s4146_s27, %s4147_s28  }
  0x10   :  { %s4148_s8 = smov [#allocation2]   ;;  %s4149_s10 = smov [#allocation7]  }
  0x11   :  { %s24_s9 = sshll.u32 %s4148_s8, 4  ;;  %s46_s11 = sshll.u32 %s4149_s10, 4  ;;  %s25_s9 = int_to_ptr.vmem [resolvable:$true] %s24_s9  ;;  %s47_s11 = int_to_ptr.vmem [resolvable:$true] %s46_s11 }
  0x12   :  { %s4023_s12 = scalar_lea.vmem %s25_s9, 224  ;;  %p4028_p6 = scmp.lt.s32.totalorder %s25_s9, %s25_s9 }
  0x13   :  { %p4024_p5 = scmp.ne.s32.totalorder %s25_s9, %s4023_s12  ;;  %p4029_p7 = scmp.lt.s32.totalorder %s4023_s12, %s4023_s12 }
  0x15   :  { %p4030_p8 = por %p4029_p7, %p4028_p6 }
  0x17   :  { %p4031_p9 = pnand %p4030_p8, %p4024_p5 }
  0x19   :  { %4034 = shalt.err (!%p4031_p9)
}
  0x1a   :  { %27 = dma.hbm_to_vmem [thread:$0]  %s4484_s0, 224, %s25_s9, [#allocation3]  }
  0x1b   :  { %s4043_s15 = scalar_lea.vmem %s47_s11, 96  ;;  %p4048_p11 = scmp.lt.s32.totalorder %s47_s11, %s47_s11 }
  0x1c   :  { %p4044_p10 = scmp.ne.s32.totalorder %s47_s11, %s4043_s15  ;;  %p4049_p12 = scmp.lt.s32.totalorder %s4043_s15, %s4043_s15 }
  0x1e   :  { %p4050_p13 = por %p4049_p12, %p4048_p11 }
  0x20   :  { %p4051_p0 = pnand %p4050_p13, %p4044_p10 }
  0x22   :  { %4054 = shalt.err (!%p4051_p0)
}
  0x23   :  { %49 = dma.hbm_to_vmem [thread:$0]  %s4486_s2, 96, %s47_s11, [#allocation6]  }
  0x24   :  { %s4150_s17 = smov [#allocation8]  }
  0x25   :  { %s58_s18 = sshll.u32 %s4150_s17, 4  ;;  %s59_s18 = int_to_ptr.vmem [resolvable:$true] %s58_s18 }
  0x26   :  { %s4063_s19 = scalar_lea.vmem %s59_s18, 16  ;;  %s4067_s20 = scalar_lea.vmem %s59_s18, 32 }
  0x27   :  { %p4064_p1 = scmp.ne.s32.totalorder %s59_s18, %s4063_s19  ;;  %p4068_p2 = scmp.lt.s32.totalorder %s59_s18, %s59_s18 }
  0x28   :  { %p4069_p3 = scmp.lt.s32.totalorder %s4067_s20, %s4063_s19 }
  0x2a   :  { %p4070_p4 = por %p4069_p3, %p4068_p2 }
  0x2c   :  { %p4071_p5 = pnand %p4070_p4, %p4064_p1 }
  0x2e   :  { %4074 = shalt.err (!%p4071_p5)
}
  0x2f   :  { %61 = dma.hbm_to_vmem [thread:$0]  %s4488_s4, 16, %s59_s18, [#allocation9]  }
  0x30   :  { %4135 = dma.done.wait [#allocation3], 224  }
  0x31   :  { %4136 = vsyncadd [#allocation3], 4294967072 }
  0x32   :  { %4137 = dma.done.wait [#allocation6], 37728  }
  0x33   :  { %4138 = vsyncadd [#allocation6], 4294929568 }
  0x34   :  { %4139 = dma.done.wait [#allocation9], 16  }
  0x35   :  { %4140 = vsyncadd [#allocation9], 4294967280  ;;  %v3500_v0 = vld [vmem:[#allocation5 + $0x154] ss:$24 sps:$4 sm:$0xff]   ;;  %v3504_v2 = vld [vmem:[#allocation5 + $0x150] ss:$24 sps:$4 sm:$0xff]   ;;  %v83_v38 = vlaneseq }
  0x36   :  { %v3502_v1 = vld [vmem:[#allocation5 + $0x454] ss:$24 sps:$4 sm:$0xff]   ;;  %1926 = vmatprep.subr.bf16.mxu0 %v3500_v0  ;;  %v3505_v3 = vld [vmem:[#allocation5 + $0x450] ss:$24 sps:$4 sm:$0xff]   ;;  %v3506_v4 = vld [vmem:[#allocation5 + $0x124] ss:$24 sps:$4 sm:$0xff]  }
  0x37   :  { %1967 = vmatprep.subr.bf16.mxu1 %v3502_v1  ;;  %1927 = vmatpush1.bf16.msra.mxu0 %v3504_v2  ;;  %v3508_v5 = vld [vmem:[#allocation5 + $0x424] ss:$24 sps:$4 sm:$0xff]   ;;  %v3510_v6 = vld [vmem:[#allocation5 + $0x120] ss:$24 sps:$4 sm:$0xff]   ;;  %v3512_v8 = vld [vmem:[#allocation5 + $0xf4] ss:$24 sps:$4 sm:$0xff]  }
  0x38   :  { %1968 = vmatpush1.bf16.msra.mxu1 %v3505_v3  ;;  %1928 = vmatprep.subr.bf16.mxu0 %v3506_v4  ;;  %v3511_v7 = vld [vmem:[#allocation5 + $0x420] ss:$24 sps:$4 sm:$0xff]   ;;  %v3514_v9 = vld [vmem:[#allocation5 + $0x3f4] ss:$24 sps:$4 sm:$0xff]   ;;  %v3516_v10 = vld [vmem:[#allocation5 + $0xf0] ss:$24 sps:$4 sm:$0xff]  }
  0x39   :  { %1969 = vmatprep.subr.bf16.mxu1 %v3508_v5  ;;  %v3517_v11 = vld [vmem:[#allocation5 + $0x3f0] ss:$24 sps:$4 sm:$0xff]   ;;  %v3518_v12 = vld [vmem:[#allocation5 + $0xc4] ss:$24 sps:$4 sm:$0xff]   ;;  %v3522_v14 = vld [vmem:[#allocation5 + $0xc0] ss:$24 sps:$4 sm:$0xff]  }
  0x3a   :  { %v3520_v13 = vld [vmem:[#allocation5 + $0x3c4] ss:$24 sps:$4 sm:$0xff]   ;;  %v3523_v15 = vld [vmem:[#allocation5 + $0x3c0] ss:$24 sps:$4 sm:$0xff]   ;;  %v3524_v16 = vld [vmem:[#allocation5 + $0x94] ss:$24 sps:$4 sm:$0xff]  }
  0x3b   :  { %1929 = vmatpush1.bf16.msra.mxu0 %v3510_v6  ;;  %v3526_v17 = vld [vmem:[#allocation5 + $0x394] ss:$24 sps:$4 sm:$0xff]   ;;  %v3528_v18 = vld [vmem:[#allocation5 + $0x90] ss:$24 sps:$4 sm:$0xff]   ;;  %v3530_v20 = vld [vmem:[#allocation5 + $0x64] ss:$24 sps:$4 sm:$0xff]  }
  0x3c   :  { %1970 = vmatpush1.bf16.msra.mxu1 %v3511_v7  ;;  %1930 = vmatprep.subr.bf16.mxu0 %v3512_v8  ;;  %v3529_v19 = vld [vmem:[#allocation5 + $0x390] ss:$24 sps:$4 sm:$0xff]   ;;  %v3532_v21 = vld [vmem:[#allocation5 + $0x364] ss:$24 sps:$4 sm:$0xff]   ;;  %v3534_v22 = vld [vmem:[#allocation5 + $0x60] ss:$24 sps:$4 sm:$0xff]  }
  0x3d   :  { %1971 = vmatprep.subr.bf16.mxu1 %v3514_v9  ;;  %v3535_v23 = vld [vmem:[#allocation5 + $0x360] ss:$24 sps:$4 sm:$0xff]   ;;  %v3536_v24 = vld [vmem:[#allocation5 + $0x34] ss:$24 sps:$4 sm:$0xff]   ;;  %v3540_v26 = vld [vmem:[#allocation5 + $0x30] ss:$24 sps:$4 sm:$0xff]  }
  0x3e   :  { %v3538_v25 = vld [vmem:[#allocation5 + $0x334] ss:$24 sps:$4 sm:$0xff]   ;;  %v3541_v27 = vld [vmem:[#allocation5 + $0x330] ss:$24 sps:$4 sm:$0xff]   ;;  %v3542_v28 = vld [vmem:[#allocation5 + $0x4] ss:$24 sps:$4 sm:$0xff]  }
  0x3f   :  { %1931 = vmatpush1.bf16.msra.mxu0 %v3516_v10  ;;  %v3544_v29 = vld [vmem:[#allocation5 + $0x304] ss:$24 sps:$4 sm:$0xff]   ;;  %v3546_v30 = vld [vmem:[#allocation5] ss:$24 sps:$4 sm:$0xff]   ;;  %v3548_v32 = vld [vmem:[#allocation5 + $0x2d4] ss:$24 sps:$4 sm:$0xff]  }
  0x40   :  { %1972 = vmatpush1.bf16.msra.mxu1 %v3517_v11  ;;  %1932 = vmatprep.subr.bf16.mxu0 %v3518_v12  ;;  %v3547_v31 = vld [vmem:[#allocation5 + $0x300] ss:$24 sps:$4 sm:$0xff]   ;;  %v3550_v33 = vld [vmem:[#allocation5 + $0x5d4] ss:$24 sps:$4 sm:$0xff]   ;;  %v3552_v34 = vld [vmem:[#allocation5 + $0x2d0] ss:$24 sps:$4 sm:$0xff]  }
  0x41   :  { %1973 = vmatprep.subr.bf16.mxu1 %v3520_v13  ;;  %v3553_v35 = vld [vmem:[#allocation5 + $0x5d0] ss:$24 sps:$4 sm:$0xff]   ;;  %v4151_v36 = vmov 1983009808   ;;  %v3554_v39 = vld [vmem:[#allocation5 + $0x2a4] ss:$24 sps:$4 sm:$0xff]  }
  0x42   :  { %v81_v37 = vunpack.c.l.s4 %v4151_v36  ;;  %v3556_v40 = vld [vmem:[#allocation5 + $0x5a4] ss:$24 sps:$4 sm:$0xff]   ;;  %v3558_v41 = vld [vmem:[#allocation5 + $0x2a0] ss:$24 sps:$4 sm:$0xff]   ;;  %v4209_v43 = vshrl.u32 %v83_v38, 7  ;;  %vm1922_vm0 = vcmask 130048  }
  0x43   :  { %1933 = vmatpush1.bf16.msra.mxu0 %v3522_v14  ;;  %v3559_v44 = vld [vmem:[#allocation5 + $0x5a0] ss:$24 sps:$4 sm:$0xff]   ;;  %v3560_v45 = vld [vmem:[#allocation5 + $0x274] ss:$24 sps:$4 sm:$0xff]   ;;  %v3564_v47 = vld [vmem:[#allocation5 + $0x270] ss:$24 sps:$4 sm:$0xff]  }
  0x44   :  { %1974 = vmatpush1.bf16.msra.mxu1 %v3523_v15  ;;  %1934 = vmatprep.subr.bf16.mxu0 %v3524_v16  ;;  %v82_v42 = vunpack.c.0.s8 %v81_v37  ;;  %v3562_v46 = vld [vmem:[#allocation5 + $0x574] ss:$24 sps:$4 sm:$0xff]   ;;  %v3565_v48 = vld [vmem:[#allocation5 + $0x570] ss:$24 sps:$4 sm:$0xff]   ;;  %v3566_v50 = vld [vmem:[#allocation5 + $0x244] ss:$24 sps:$4 sm:$0xff]  }
  0x45   :  { %1975 = vmatprep.subr.bf16.mxu1 %v3526_v17  ;;  %v3568_v51 = vld [vmem:[#allocation5 + $0x544] ss:$24 sps:$4 sm:$0xff]   ;;  %v75_v52 = vld [vmem:[#allocation2] sm:$0xff]  ;;  %v3613_v36 = vld [vmem:[#allocation5 + $0x128] ss:$24 sps:$4 sm:$0xff]   ;;  %vm3011_vm1 = vcmask 517120  }
  0x46   :  { %v4212_v49 = vsub.s32 %v82_v42, %v4209_v43  ;;  %v3570_v53 = vld [vmem:[#allocation5 + $0x240] ss:$24 sps:$4 sm:$0xff]   ;;  %v79_v55 = vcombine.high %v75_v52, %v75_v52  ;;  %v3572_v57 = vld [vmem:[#allocation5 + $0x214] ss:$24 sps:$4 sm:$0xff]   ;;  %v3576_v61 = vld [vmem:[#allocation5 + $0x210] ss:$24 sps:$4 sm:$0xff]  }
  0x47   :  { %1935 = vmatpush1.bf16.msra.mxu0 %v3528_v18  ;;  %v3571_v56 = vld [vmem:[#allocation5 + $0x540] ss:$24 sps:$4 sm:$0xff]   ;;  %v3574_v58 = vld [vmem:[#allocation5 + $0x514] ss:$24 sps:$4 sm:$0xff]   ;;  %v3577_v0 = vld [vmem:[#allocation5 + $0x510] ss:$24 sps:$4 sm:$0xff]  }
  0x48   :  { %1976 = vmatpush1.bf16.msra.mxu1 %v3529_v19  ;;  %1936 = vmatprep.subr.bf16.mxu0 %v3530_v20  ;;  %v86_v54 = vrot.slane %v75_v52, %v4212_v49  ;;  %v93_v60 = vrot.slane %v79_v55, %v4212_v49  ;;  %v3578_v1 = vld [vmem:[#allocation5 + $0x1e4] ss:$24 sps:$4 sm:$0xff]   ;;  %v3582_v4 = vld [vmem:[#allocation5 + $0x1e0] ss:$24 sps:$4 sm:$0xff]   ;;  %v3584_v6 = vld [vmem:[#allocation5 + $0x1b4] ss:$24 sps:$4 sm:$0xff]  }
  0x49   :  { %1977 = vmatprep.subr.bf16.mxu1 %v3532_v21  ;;  %v3580_v2 = vld [vmem:[#allocation5 + $0x4e4] ss:$24 sps:$4 sm:$0xff]   ;;  %v3583_v5 = vld [vmem:[#allocation5 + $0x4e0] ss:$24 sps:$4 sm:$0xff]   ;;  %v3586_v7 = vld [vmem:[#allocation5 + $0x4b4] ss:$24 sps:$4 sm:$0xff]  }
  0x4a   :  { %v94_v59 = vcombine.high %v86_v54, %v86_v54  ;;  %v95_v63 = vcombine.high %v93_v60, %v93_v60  ;;  %v3588_v8 = vld [vmem:[#allocation5 + $0x1b0] ss:$24 sps:$4 sm:$0xff]   ;;  %v3590_v10 = vld [vmem:[#allocation5 + $0x184] ss:$24 sps:$4 sm:$0xff]   ;;  %v3594_v14 = vld [vmem:[#allocation5 + $0x180] ss:$24 sps:$4 sm:$0xff]   ;;  %v4227_v19 = vpack.c.bf16 %v86_v54, %v86_v54  ;;  %v4229_v20 = vpack.c.bf16 %v93_v60, %v93_v60 }
  0x4b   :  { %1937 = vmatpush1.bf16.msra.mxu0 %v3534_v22  ;;  %v3589_v9 = vld [vmem:[#allocation5 + $0x4b0] ss:$24 sps:$4 sm:$0xff]   ;;  %v3592_v11 = vld [vmem:[#allocation5 + $0x484] ss:$24 sps:$4 sm:$0xff]   ;;  %v3595_v15 = vld [vmem:[#allocation5 + $0x480] ss:$24 sps:$4 sm:$0xff]  }
  0x4c   :  { %1978 = vmatpush1.bf16.msra.mxu1 %v3535_v23  ;;  %1938 = vmatprep.subr.bf16.mxu0 %v3536_v24  ;;  %v4216_v62 = vpack.c.bf16 %v94_v59, %v94_v59  ;;  %v4218_v3 = vpack.c.bf16 %v95_v63, %v95_v63  ;;  %v76_v12 = vld [vmem:[#allocation2 + $0x8] sm:$0x3f]  ;;  %v3599_v16 = vld [vmem:[#allocation5 + $0x754] ss:$24 sps:$4 sm:$0xff]   ;;  %v3597_v22 = vld [vmem:[#allocation5 + $0x750] ss:$24 sps:$4 sm:$0xff]  }
  0x4d   :  { %1979 = vmatprep.subr.bf16.mxu1 %v3538_v25  ;;  %v4223_v13 = vrot.slane %v76_v12, %v4212_v49  ;;  %v3602_v17 = vld [vmem:[#allocation5 + $0x904] ss:$24 sps:$4 sm:$0xff]   ;;  %v96_v21 = vcombine.high %v76_v12, %v76_v12  ;;  %v3600_v23 = vld [vmem:[#allocation5 + $0x900] ss:$24 sps:$4 sm:$0xff]   ;;  %v3646_v59 = vld [vmem:[#allocation5 + $0x8d0] ss:$24 sps:$4 sm:$0xff]  }
  0x4e   :  { %1958 = vmatprep.mubr.bf16.mxu0 %v4216_v62  ;;  %1999 = vmatprep.mubr.bf16.mxu1 %v4218_v3  ;;  %v3605_v24 = vld [vmem:[#allocation5 + $0x724] ss:$24 sps:$4 sm:$0xff]   ;;  %v3616_v37 = vld [vmem:[#allocation5 + $0x6c0] ss:$24 sps:$4 sm:$0xff]  }
  0x4f   :  { %1939 = vmatpush1.bf16.msra.mxu0 %v3540_v26  ;;  %v111_v18 = vcombine.high %v4223_v13, %v4223_v13  ;;  %v3608_v25 = vld [vmem:[#allocation5 + $0x15c] ss:$24 sps:$4 sm:$0xff]   ;;  %v3627_v42 = vld [vmem:[#allocation5 + $0xcc] ss:$24 sps:$4 sm:$0xff]   ;;  %v3637_v54 = vld [vmem:[#allocation5 + $0x68] ss:$24 sps:$4 sm:$0xff]  }
  0x50   :  { %1980 = vmatpush1.bf16.msra.mxu1 %v3541_v27  ;;  %1940 = vmatprep.subr.bf16.mxu0 %v3542_v28  ;;  %v110_v27 = vrot.slane %v96_v21, %v4212_v49  ;;  %v3603_v28 = vld [vmem:[#allocation5 + $0x720] ss:$24 sps:$4 sm:$0xff]   ;;  %v3621_v38 = vld [vmem:[#allocation5 + $0xfc] ss:$24 sps:$4 sm:$0xff]   ;;  %v3639_v52 = vld [vmem:[#allocation5 + $0x6c] ss:$24 sps:$4 sm:$0xff]  }
  0x51   :  { %1981 = vmatprep.subr.bf16.mxu1 %v3544_v29  ;;  %v4231_v26 = vpack.c.bf16 %v111_v18, %v111_v18  ;;  %v4152_v29 = vmov 0   ;;  %v3640_v55 = vld [vmem:[#allocation5 + $0x600] ss:$24 sps:$4 sm:$0xff]   ;;  %v3651_v60 = vld [vmem:[#allocation5 + $0xc] ss:$24 sps:$4 sm:$0xff]  }
  0x52   :  { %v3649_v63 = vld [vmem:[#allocation5 + $0x8] ss:$24 sps:$4 sm:$0xff]   ;;  %v3667_v12 = vld [vmem:[#allocation5 + $0x278] ss:$24 sps:$4 sm:$0xff]   ;;  %v3681_v21 = vld [vmem:[#allocation5 + $0x21c] ss:$24 sps:$4 sm:$0xff]  }
  0x53   :  { %1941 = vmatpush1.bf16.msra.mxu0 %v3546_v30  ;;  %v3611_v30 = vld [vmem:[#allocation5 + $0x6f4] ss:$24 sps:$4 sm:$0xff]   ;;  %v3676_v18 = vld [vmem:[#allocation5 + $0x7e0] ss:$24 sps:$4 sm:$0xff]  }
  0x54   :  { %1982 = vmatpush1.bf16.msra.mxu1 %v3547_v31  ;;  %1942 = vmatprep.subr.bf16.mxu0 %v3548_v32  ;;  %v4238_v31 = vpack.c.bf16 %v110_v27, %v110_v27  ;;  %v3606_v32 = vld [vmem:[#allocation5 + $0x158] ss:$24 sps:$4 sm:$0xff]   ;;  %v3690_v27 = vld [vmem:[#allocation5 + $0x784] ss:$24 sps:$4 sm:$0xff]  }
  0x55   :  { %1983 = vmatprep.subr.bf16.mxu1 %v3550_v33  ;;  %v3609_v33 = vld [vmem:[#allocation5 + $0x6f0] ss:$24 sps:$4 sm:$0xff]  }
  0x57   :  { %1943 = vmatpush2.bf16.msra.mxu0 %v3552_v34  ;;  %v3615_v34 = vld [vmem:[#allocation5 + $0x12c] ss:$24 sps:$4 sm:$0xff]  }
  0x58   :  { %1984 = vmatpush2.bf16.msra.mxu1 %v3553_v35  ;;  %1944 = vmatprep.subr.bf16.mxu0 %v3554_v39  ;;  %v3618_v35 = vld [vmem:[#allocation5 + $0x6c4] ss:$24 sps:$4 sm:$0xff]   ;;  %v3624_v39 = vld [vmem:[#allocation5 + $0x694] ss:$24 sps:$4 sm:$0xff]  }
  0x59   :  { %1985 = vmatprep.subr.bf16.mxu1 %v3556_v40  ;;  %v3619_v40 = vld [vmem:[#allocation5 + $0xf8] ss:$24 sps:$4 sm:$0xff]  }
  0x5b   :  { %1945 = vmatpush2.bf16.msra.mxu0 %v3558_v41  ;;  %v3622_v41 = vld [vmem:[#allocation5 + $0x690] ss:$24 sps:$4 sm:$0xff]  }
  0x5c   :  { %1986 = vmatpush2.bf16.msra.mxu1 %v3559_v44  ;;  %1946 = vmatprep.subr.bf16.mxu0 %v3560_v45  ;;  %v3630_v44 = vld [vmem:[#allocation5 + $0x664] ss:$24 sps:$4 sm:$0xff]   ;;  %v3625_v45 = vld [vmem:[#allocation5 + $0xc8] ss:$24 sps:$4 sm:$0xff]  }
  0x5d   :  { %1987 = vmatprep.subr.bf16.mxu1 %v3562_v46  ;;  %v3628_v46 = vld [vmem:[#allocation5 + $0x660] ss:$24 sps:$4 sm:$0xff]  }
  0x5f   :  { %1947 = vmatpush2.bf16.msra.mxu0 %v3564_v47  ;;  %v3633_v47 = vld [vmem:[#allocation5 + $0x9c] ss:$24 sps:$4 sm:$0xff]  }
  0x60   :  { %1988 = vmatpush2.bf16.msra.mxu1 %v3565_v48  ;;  %1948 = vmatprep.subr.bf16.mxu0 %v3566_v50  ;;  %v3636_v48 = vld [vmem:[#allocation5 + $0x634] ss:$24 sps:$4 sm:$0xff]   ;;  %v3631_v50 = vld [vmem:[#allocation5 + $0x98] ss:$24 sps:$4 sm:$0xff]  }
  0x61   :  { %1989 = vmatprep.subr.bf16.mxu1 %v3568_v51  ;;  %v3634_v51 = vld [vmem:[#allocation5 + $0x630] ss:$24 sps:$4 sm:$0xff]  }
  0x63   :  { %1949 = vmatpush2.bf16.msra.mxu0 %v3570_v53  ;;  %v3642_v53 = vld [vmem:[#allocation5 + $0x604] ss:$24 sps:$4 sm:$0xff]  }
  0x64   :  { %1990 = vmatpush2.bf16.msra.mxu1 %v3571_v56  ;;  %1950 = vmatprep.subr.bf16.mxu0 %v3572_v57  ;;  %v3645_v56 = vld [vmem:[#allocation5 + $0x3c] ss:$24 sps:$4 sm:$0xff]  }
  0x65   :  { %1991 = vmatprep.subr.bf16.mxu1 %v3574_v58  ;;  %v3648_v57 = vld [vmem:[#allocation5 + $0x8d4] ss:$24 sps:$4 sm:$0xff]   ;;  %v3643_v58 = vld [vmem:[#allocation5 + $0x38] ss:$24 sps:$4 sm:$0xff]  }
  0x67   :  { %1951 = vmatpush2.bf16.msra.mxu0 %v3576_v61  ;;  %v3654_v61 = vld [vmem:[#allocation5 + $0x8a4] ss:$24 sps:$4 sm:$0xff]  }
  0x68   :  { %1992 = vmatpush2.bf16.msra.mxu1 %v3577_v0  ;;  %1952 = vmatprep.subr.bf16.mxu0 %v3578_v1  ;;  %v3652_v0 = vld [vmem:[#allocation5 + $0x8a0] ss:$24 sps:$4 sm:$0xff]   ;;  %v3657_v1 = vld [vmem:[#allocation5 + $0x2dc] ss:$24 sps:$4 sm:$0xff]  }
  0x69   :  { %1993 = vmatprep.subr.bf16.mxu1 %v3580_v2  ;;  %v3660_v2 = vld [vmem:[#allocation5 + $0x874] ss:$24 sps:$4 sm:$0xff]  }
  0x6b   :  { %1953 = vmatpush2.bf16.msra.mxu0 %v3582_v4  ;;  %v3655_v4 = vld [vmem:[#allocation5 + $0x2d8] ss:$24 sps:$4 sm:$0xff]  }
  0x6c   :  { %1994 = vmatpush2.bf16.msra.mxu1 %v3583_v5  ;;  %1954 = vmatprep.subr.bf16.mxu0 %v3584_v6  ;;  %v3658_v5 = vld [vmem:[#allocation5 + $0x870] ss:$24 sps:$4 sm:$0xff]   ;;  %v3663_v6 = vld [vmem:[#allocation5 + $0x2ac] ss:$24 sps:$4 sm:$0xff]  }
  0x6d   :  { %1995 = vmatprep.subr.bf16.mxu1 %v3586_v7  ;;  %v3666_v7 = vld [vmem:[#allocation5 + $0x844] ss:$24 sps:$4 sm:$0xff]  }
  0x6f   :  { %1955 = vmatpush2.bf16.msra.mxu0 %v3588_v8  ;;  %v3661_v8 = vld [vmem:[#allocation5 + $0x2a8] ss:$24 sps:$4 sm:$0xff]  }
  0x70   :  { %1996 = vmatpush2.bf16.msra.mxu1 %v3589_v9  ;;  %1956 = vmatprep.subr.bf16.mxu0 %v3590_v10  ;;  %v3664_v9 = vld [vmem:[#allocation5 + $0x840] ss:$24 sps:$4 sm:$0xff]   ;;  %v3669_v10 = vld [vmem:[#allocation5 + $0x27c] ss:$24 sps:$4 sm:$0xff]  }
  0x71   :  { %1997 = vmatprep.subr.bf16.mxu1 %v3592_v11  ;;  %v3672_v11 = vld [vmem:[#allocation5 + $0x814] ss:$24 sps:$4 sm:$0xff]  }
  0x73   :  { %1957 = vmatpush2.bf16.msra.mxu0 %v3594_v14  ;;  %v3670_v14 = vld [vmem:[#allocation5 + $0x810] ss:$24 sps:$4 sm:$0xff]  }
  0x74   :  { %1998 = vmatpush2.bf16.msra.mxu1 %v3595_v15  ;;  %2008 = vmatprep.subr.bf16.mxu0 %v3599_v16  ;;  %v3675_v15 = vld [vmem:[#allocation5 + $0x24c] ss:$24 sps:$4 sm:$0xff]  }
  0x75   :  { %2063 = vmatprep.subr.bf16.mxu1 %v3602_v17  ;;  %v3678_v16 = vld [vmem:[#allocation5 + $0x7e4] ss:$24 sps:$4 sm:$0xff]   ;;  %v3673_v17 = vld [vmem:[#allocation5 + $0x248] ss:$24 sps:$4 sm:$0xff]  }
  0x76   :  { %1959 = vmatmul.mubr.bf16.vlgmr.msra.gmra.mxu0 %v4227_v19 }
  0x77   :  { %2000 = vmatmul.mubr.bf16.vlgmr.msra.gmra.mxu1 %v4229_v20  ;;  %2009 = vmatpush1.bf16.msra.mxu0 %v3597_v22  ;;  %v3684_v22 = vld [vmem:[#allocation5 + $0x7b4] ss:$24 sps:$4 sm:$0xff]  }
  0x78   :  { %2064 = vmatpush1.bf16.msra.mxu1 %v3600_v23  ;;  %2010 = vmatprep.subr.bf16.mxu0 %v3605_v24  ;;  %v3679_v23 = vld [vmem:[#allocation5 + $0x218] ss:$24 sps:$4 sm:$0xff]  }
  0x79   :  { %2081 = vmatprep.mubr.bf16.mxu1 %v4152_v29  ;;  %2090 = vmatprep.subr.bf16.mxu1 %v3608_v25  ;;  %v3682_v24 = vld [vmem:[#allocation5 + $0x7b0] ss:$24 sps:$4 sm:$0xff]   ;;  %v3687_v25 = vld [vmem:[#allocation5 + $0x1ec] ss:$24 sps:$4 sm:$0xff]  }
  0x7a   :  { %2040 = vmatprep.mubr.bf16.mxu0 %v4231_v26 }
  0x7b   :  { %2011 = vmatpush1.bf16.msra.mxu0 %v3603_v28  ;;  %v3685_v28 = vld [vmem:[#allocation5 + $0x1e8] ss:$24 sps:$4 sm:$0xff]  }
  0x7c   :  { %2012 = vmatprep.subr.bf16.mxu0 %v3611_v30  ;;  %v3688_v30 = vld [vmem:[#allocation5 + $0x780] ss:$24 sps:$4 sm:$0xff]  }
  0x7f   :  { %3368 = vmatmul.mubr.msk.bf16.vlgmr.msra.gmra.mxu1 %vm1922_vm0, %v4238_v31  ;;  %2013 = vmatpush1.bf16.msra.mxu0 %v3609_v33  ;;  %v3696_v33 = vld [vmem:[#allocation5 + $0x45c] ss:$24 sps:$4 sm:$0xff]  }
  0x80   :  { %2091 = vmatpush1.bf16.msra.mxu1 %v3606_v32  ;;  %2014 = vmatprep.subr.bf16.mxu0 %v3618_v35  ;;  %v3693_v32 = vld [vmem:[#allocation5 + $0x1bc] ss:$24 sps:$4 sm:$0xff]   ;;  %v3691_v35 = vld [vmem:[#allocation5 + $0x1b8] ss:$24 sps:$4 sm:$0xff]  }
  0x81   :  { %2092 = vmatprep.subr.bf16.mxu1 %v3615_v34  ;;  %2122 = vmatprep.mubr.bf16.mxu1 %v4216_v62  ;;  %v4245_v34 = vpack.c.bf16 %v4223_v13, %v4223_v13  ;;  %v3703_v13 = vld [vmem:[#allocation5 + $0x758] ss:$24 sps:$4 sm:$0xff]  }
  0x83   :  { %2015 = vmatpush1.bf16.msra.mxu0 %v3616_v37  ;;  %v3699_v37 = vld [vmem:[#allocation5 + $0x18c] ss:$24 sps:$4 sm:$0xff]  }
  0x84   :  { %2093 = vmatpush1.bf16.msra.mxu1 %v3613_v36  ;;  %2016 = vmatprep.subr.bf16.mxu0 %v3624_v39  ;;  %v3694_v36 = vld [vmem:[#allocation5 + $0x458] ss:$24 sps:$4 sm:$0xff]   ;;  %v3697_v39 = vld [vmem:[#allocation5 + $0x188] ss:$24 sps:$4 sm:$0xff]  }
  0x85   :  { %2094 = vmatprep.subr.bf16.mxu1 %v3621_v38  ;;  %v3702_v38 = vld [vmem:[#allocation5 + $0x42c] ss:$24 sps:$4 sm:$0xff]  }
  0x87   :  { %2017 = vmatpush1.bf16.msra.mxu0 %v3622_v41  ;;  %v3705_v41 = vld [vmem:[#allocation5 + $0x75c] ss:$24 sps:$4 sm:$0xff]  }
  0x88   :  { %2095 = vmatpush1.bf16.msra.mxu1 %v3619_v40  ;;  %2018 = vmatprep.subr.bf16.mxu0 %v3630_v44  ;;  %v3700_v40 = vld [vmem:[#allocation5 + $0x428] ss:$24 sps:$4 sm:$0xff]   ;;  %v3706_v44 = vld [vmem:[#allocation5 + $0x3f8] ss:$24 sps:$4 sm:$0xff]  }
  0x89   :  { %2096 = vmatprep.subr.bf16.mxu1 %v3627_v42  ;;  %v3708_v42 = vld [vmem:[#allocation5 + $0x3fc] ss:$24 sps:$4 sm:$0xff]  }
  0x8b   :  { %2019 = vmatpush1.bf16.msra.mxu0 %v3628_v46  ;;  %v3714_v46 = vld [vmem:[#allocation5 + $0x3cc] ss:$24 sps:$4 sm:$0xff]  }
  0x8c   :  { %2097 = vmatpush1.bf16.msra.mxu1 %v3625_v45  ;;  %2020 = vmatprep.subr.bf16.mxu0 %v3636_v48  ;;  %v3711_v45 = vld [vmem:[#allocation5 + $0x72c] ss:$24 sps:$4 sm:$0xff]   ;;  %v3712_v48 = vld [vmem:[#allocation5 + $0x3c8] ss:$24 sps:$4 sm:$0xff]  }
  0x8d   :  { %2098 = vmatprep.subr.bf16.mxu1 %v3633_v47  ;;  %v3709_v47 = vld [vmem:[#allocation5 + $0x728] ss:$24 sps:$4 sm:$0xff]  }
  0x8f   :  { %2021 = vmatpush1.bf16.msra.mxu0 %v3634_v51  ;;  %v3720_v51 = vld [vmem:[#allocation5 + $0x39c] ss:$24 sps:$4 sm:$0xff]  }
  0x90   :  { %2099 = vmatpush1.bf16.msra.mxu1 %v3631_v50  ;;  %2022 = vmatprep.subr.bf16.mxu0 %v3642_v53  ;;  %v3717_v50 = vld [vmem:[#allocation5 + $0x6fc] ss:$24 sps:$4 sm:$0xff]   ;;  %v3718_v53 = vld [vmem:[#allocation5 + $0x398] ss:$24 sps:$4 sm:$0xff]  }
  0x91   :  { %2100 = vmatprep.subr.bf16.mxu1 %v3639_v52  ;;  %v3715_v52 = vld [vmem:[#allocation5 + $0x6f8] ss:$24 sps:$4 sm:$0xff]  }
  0x93   :  { %2023 = vmatpush1.bf16.msra.mxu0 %v3640_v55  ;;  %v3726_v55 = vld [vmem:[#allocation5 + $0x36c] ss:$24 sps:$4 sm:$0xff]  }
  0x94   :  { %2101 = vmatpush1.bf16.msra.mxu1 %v3637_v54  ;;  %2024 = vmatprep.subr.bf16.mxu0 %v3648_v57  ;;  %v3723_v54 = vld [vmem:[#allocation5 + $0x6cc] ss:$24 sps:$4 sm:$0xff]   ;;  %v3724_v57 = vld [vmem:[#allocation5 + $0x368] ss:$24 sps:$4 sm:$0xff]  }
  0x95   :  { %2102 = vmatprep.subr.bf16.mxu1 %v3645_v56  ;;  %v3721_v56 = vld [vmem:[#allocation5 + $0x6c8] ss:$24 sps:$4 sm:$0xff]  }
  0x97   :  { %2025 = vmatpush2.bf16.msra.mxu0 %v3646_v59  ;;  %v3732_v59 = vld [vmem:[#allocation5 + $0x33c] ss:$24 sps:$4 sm:$0xff]  }
  0x98   :  { %2103 = vmatpush1.bf16.msra.mxu1 %v3643_v58  ;;  %2026 = vmatprep.subr.bf16.mxu0 %v3654_v61  ;;  %v3729_v58 = vld [vmem:[#allocation5 + $0x69c] ss:$24 sps:$4 sm:$0xff]   ;;  %v3730_v61 = vld [vmem:[#allocation5 + $0x338] ss:$24 sps:$4 sm:$0xff]  }
  0x99   :  { %2104 = vmatprep.subr.bf16.mxu1 %v3651_v60  ;;  %v3727_v60 = vld [vmem:[#allocation5 + $0x698] ss:$24 sps:$4 sm:$0xff]  }
  0x9b   :  { %2027 = vmatpush2.bf16.msra.mxu0 %v3652_v0  ;;  %v3738_v0 = vld [vmem:[#allocation5 + $0x30c] ss:$24 sps:$4 sm:$0xff]  }
  0x9c   :  { %2105 = vmatpush1.bf16.msra.mxu1 %v3649_v63  ;;  %2028 = vmatprep.subr.bf16.mxu0 %v3660_v2  ;;  %v3735_v63 = vld [vmem:[#allocation5 + $0x66c] ss:$24 sps:$4 sm:$0xff]   ;;  %v3736_v2 = vld [vmem:[#allocation5 + $0x308] ss:$24 sps:$4 sm:$0xff]  }
  0x9d   :  { %2106 = vmatprep.subr.bf16.mxu1 %v3657_v1  ;;  %v3733_v1 = vld [vmem:[#allocation5 + $0x668] ss:$24 sps:$4 sm:$0xff]  }
  0x9f   :  { %2029 = vmatpush2.bf16.msra.mxu0 %v3658_v5  ;;  %v3744_v5 = vld [vmem:[#allocation5 + $0x5dc] ss:$24 sps:$4 sm:$0xff]  }
  0xa0   :  { %2107 = vmatpush2.bf16.msra.mxu1 %v3655_v4  ;;  %2030 = vmatprep.subr.bf16.mxu0 %v3666_v7  ;;  %v3741_v4 = vld [vmem:[#allocation5 + $0x63c] ss:$24 sps:$4 sm:$0xff]   ;;  %v3742_v7 = vld [vmem:[#allocation5 + $0x5d8] ss:$24 sps:$4 sm:$0xff]  }
  0xa1   :  { %2108 = vmatprep.subr.bf16.mxu1 %v3663_v6  ;;  %v3739_v6 = vld [vmem:[#allocation5 + $0x638] ss:$24 sps:$4 sm:$0xff]  }
  0xa3   :  { %2031 = vmatpush2.bf16.msra.mxu0 %v3664_v9  ;;  %v3750_v9 = vld [vmem:[#allocation5 + $0x5ac] ss:$24 sps:$4 sm:$0xff]  }
  0xa4   :  { %2109 = vmatpush2.bf16.msra.mxu1 %v3661_v8  ;;  %2032 = vmatprep.subr.bf16.mxu0 %v3672_v11  ;;  %v3747_v8 = vld [vmem:[#allocation5 + $0x60c] ss:$24 sps:$4 sm:$0xff]   ;;  %v3748_v11 = vld [vmem:[#allocation5 + $0x5a8] ss:$24 sps:$4 sm:$0xff]  }
  0xa5   :  { %2110 = vmatprep.subr.bf16.mxu1 %v3669_v10  ;;  %v3745_v10 = vld [vmem:[#allocation5 + $0x608] ss:$24 sps:$4 sm:$0xff]  }
  0xa7   :  { %2033 = vmatpush2.bf16.msra.mxu0 %v3670_v14  ;;  %v3756_v14 = vld [vmem:[#allocation5 + $0x57c] ss:$24 sps:$4 sm:$0xff]  }
  0xa8   :  { %2111 = vmatpush2.bf16.msra.mxu1 %v3667_v12  ;;  %2034 = vmatprep.subr.bf16.mxu0 %v3678_v16  ;;  %v3753_v12 = vld [vmem:[#allocation5 + $0x8dc] ss:$24 sps:$4 sm:$0xff]   ;;  %v3754_v16 = vld [vmem:[#allocation5 + $0x578] ss:$24 sps:$4 sm:$0xff]  }
  0xa9   :  { %2112 = vmatprep.subr.bf16.mxu1 %v3675_v15  ;;  %v3751_v15 = vld [vmem:[#allocation5 + $0x8d8] ss:$24 sps:$4 sm:$0xff]  }
  0xab   :  { %2035 = vmatpush2.bf16.msra.mxu0 %v3676_v18  ;;  %v3762_v18 = vld [vmem:[#allocation5 + $0x54c] ss:$24 sps:$4 sm:$0xff]  }
  0xac   :  { %2113 = vmatpush2.bf16.msra.mxu1 %v3673_v17  ;;  %2036 = vmatprep.subr.bf16.mxu0 %v3684_v22  ;;  %v3759_v17 = vld [vmem:[#allocation5 + $0x8ac] ss:$24 sps:$4 sm:$0xff]   ;;  %v3760_v22 = vld [vmem:[#allocation5 + $0x548] ss:$24 sps:$4 sm:$0xff]  }
  0xad   :  { %2114 = vmatprep.subr.bf16.mxu1 %v3681_v21  ;;  %v3757_v21 = vld [vmem:[#allocation5 + $0x8a8] ss:$24 sps:$4 sm:$0xff]  }
  0xaf   :  { %2037 = vmatpush2.bf16.msra.mxu0 %v3682_v24  ;;  %v3768_v24 = vld [vmem:[#allocation5 + $0x51c] ss:$24 sps:$4 sm:$0xff]  }
  0xb0   :  { %2115 = vmatpush2.bf16.msra.mxu1 %v3679_v23  ;;  %2038 = vmatprep.subr.bf16.mxu0 %v3690_v27  ;;  %v3765_v23 = vld [vmem:[#allocation5 + $0x87c] ss:$24 sps:$4 sm:$0xff]   ;;  %v3766_v27 = vld [vmem:[#allocation5 + $0x518] ss:$24 sps:$4 sm:$0xff]  }
  0xb1   :  { %2116 = vmatprep.subr.bf16.mxu1 %v3687_v25  ;;  %v3763_v25 = vld [vmem:[#allocation5 + $0x878] ss:$24 sps:$4 sm:$0xff]  }
  0xb3   :  { %2039 = vmatpush2.bf16.msra.mxu0 %v3688_v30  ;;  %v3774_v30 = vld [vmem:[#allocation5 + $0x4ec] ss:$24 sps:$4 sm:$0xff]  }
  0xb4   :  { %2117 = vmatpush2.bf16.msra.mxu1 %v3685_v28  ;;  %2131 = vmatprep.subr.bf16.mxu0 %v3696_v33  ;;  %v3771_v28 = vld [vmem:[#allocation5 + $0x84c] ss:$24 sps:$4 sm:$0xff]   ;;  %v3772_v33 = vld [vmem:[#allocation5 + $0x4e8] ss:$24 sps:$4 sm:$0xff]  }
  0xb5   :  { %2118 = vmatprep.subr.bf16.mxu1 %v3693_v32  ;;  %v3769_v32 = vld [vmem:[#allocation5 + $0x848] ss:$24 sps:$4 sm:$0xff]  }
  0xb6   :  { %2041 = vmatmul.mubr.bf16.vlgmr.msra.gmra.mxu0 %v4245_v34 }
  0xb7   :  { %2132 = vmatpush1.bf16.msra.mxu0 %v3694_v36  ;;  %2163 = vmatprep.mubr.bf16.mxu0 %v4218_v3  ;;  %v3780_v36 = vld [vmem:[#allocation5 + $0x4bc] ss:$24 sps:$4 sm:$0xff]  }
  0xb8   :  { %2119 = vmatpush2.bf16.msra.mxu1 %v3691_v35  ;;  %2133 = vmatprep.subr.bf16.mxu0 %v3702_v38  ;;  %v3777_v35 = vld [vmem:[#allocation5 + $0x81c] ss:$24 sps:$4 sm:$0xff]   ;;  %v3778_v38 = vld [vmem:[#allocation5 + $0x4b8] ss:$24 sps:$4 sm:$0xff]  }
  0xb9   :  { %2120 = vmatprep.subr.bf16.mxu1 %v3699_v37  ;;  %v3775_v37 = vld [vmem:[#allocation5 + $0x818] ss:$24 sps:$4 sm:$0xff]  }
  0xbb   :  { %2134 = vmatpush1.bf16.msra.mxu0 %v3700_v40  ;;  %v3786_v40 = vld [vmem:[#allocation5 + $0x48c] ss:$24 sps:$4 sm:$0xff]  }
  0xbc   :  { %2121 = vmatpush2.bf16.msra.mxu1 %v3697_v39  ;;  %2135 = vmatprep.subr.bf16.mxu0 %v3708_v42  ;;  %v3783_v39 = vld [vmem:[#allocation5 + $0x7ec] ss:$24 sps:$4 sm:$0xff]   ;;  %v3784_v42 = vld [vmem:[#allocation5 + $0x488] ss:$24 sps:$4 sm:$0xff]  }
  0xbd   :  { %2172 = vmatprep.subr.bf16.mxu1 %v3705_v41  ;;  %v3781_v41 = vld [vmem:[#allocation5 + $0x7e8] ss:$24 sps:$4 sm:$0xff]  }
  0xbf   :  { %2123 = vmatmul.mubr.bf16.vlgmr.msra.gmra.mxu1 %v4227_v19  ;;  %2136 = vmatpush1.bf16.msra.mxu0 %v3706_v44  ;;  %v3792_v44 = vld [vmem:[#allocation5 + $0x164] ss:$24 sps:$4 sm:$0xff]  }
  0xc0   :  { %2173 = vmatpush1.bf16.msra.mxu1 %v3703_v13  ;;  %2137 = vmatprep.subr.bf16.mxu0 %v3714_v46  ;;  %v3789_v13 = vld [vmem:[#allocation5 + $0x7bc] ss:$24 sps:$4 sm:$0xff]   ;;  %v3790_v46 = vld [vmem:[#allocation5 + $0x160] ss:$24 sps:$4 sm:$0xff]  }
  0xc1   :  { %2174 = vmatprep.subr.bf16.mxu1 %v3711_v45  ;;  %2204 = vmatprep.mubr.bf16.mxu1 %v4231_v26  ;;  %v3787_v45 = vld [vmem:[#allocation5 + $0x7b8] ss:$24 sps:$4 sm:$0xff]  }
  0xc3   :  { %2138 = vmatpush1.bf16.msra.mxu0 %v3712_v48  ;;  %v3798_v48 = vld [vmem:[#allocation5 + $0x134] ss:$24 sps:$4 sm:$0xff]  }
  0xc4   :  { %2175 = vmatpush1.bf16.msra.mxu1 %v3709_v47  ;;  %2139 = vmatprep.subr.bf16.mxu0 %v3720_v51  ;;  %v3795_v47 = vld [vmem:[#allocation5 + $0x78c] ss:$24 sps:$4 sm:$0xff]   ;;  %v3796_v51 = vld [vmem:[#allocation5 + $0x130] ss:$24 sps:$4 sm:$0xff]  }
  0xc5   :  { %2176 = vmatprep.subr.bf16.mxu1 %v3717_v50  ;;  %v3793_v50 = vld [vmem:[#allocation5 + $0x788] ss:$24 sps:$4 sm:$0xff]  }
  0xc7   :  { %2140 = vmatpush1.bf16.msra.mxu0 %v3718_v53  ;;  %v3804_v53 = vld [vmem:[#allocation5 + $0x90c] ss:$24 sps:$4 sm:$0xff]  }
  0xc8   :  { %2177 = vmatpush1.bf16.msra.mxu1 %v3715_v52  ;;  %2141 = vmatprep.subr.bf16.mxu0 %v3726_v55  ;;  %v3801_v52 = vld [vmem:[#allocation5 + $0x104] ss:$24 sps:$4 sm:$0xff]   ;;  %v3802_v55 = vld [vmem:[#allocation5 + $0x908] ss:$24 sps:$4 sm:$0xff]  }
  0xc9   :  { %2178 = vmatprep.subr.bf16.mxu1 %v3723_v54  ;;  %v3799_v54 = vld [vmem:[#allocation5 + $0x100] ss:$24 sps:$4 sm:$0xff]  }
  0xcb   :  { %2142 = vmatpush1.bf16.msra.mxu0 %v3724_v57  ;;  %v3810_v57 = vld [vmem:[#allocation5 + $0x464] ss:$24 sps:$4 sm:$0xff]  }
  0xcc   :  { %2179 = vmatpush1.bf16.msra.mxu1 %v3721_v56  ;;  %2143 = vmatprep.subr.bf16.mxu0 %v3732_v59  ;;  %v3807_v56 = vld [vmem:[#allocation5 + $0xd4] ss:$24 sps:$4 sm:$0xff]   ;;  %v3813_v59 = vld [vmem:[#allocation5 + $0xa4] ss:$24 sps:$4 sm:$0xff]  }
  0xcd   :  { %2180 = vmatprep.subr.bf16.mxu1 %v3729_v58  ;;  %v3805_v58 = vld [vmem:[#allocation5 + $0xd0] ss:$24 sps:$4 sm:$0xff]  }
  0xcf   :  { %2144 = vmatpush1.bf16.msra.mxu0 %v3730_v61  ;;  %v3816_v61 = vld [vmem:[#allocation5 + $0x434] ss:$24 sps:$4 sm:$0xff]  }
  0xd0   :  { %2181 = vmatpush1.bf16.msra.mxu1 %v3727_v60  ;;  %2145 = vmatprep.subr.bf16.mxu0 %v3738_v0  ;;  %v3808_v60 = vld [vmem:[#allocation5 + $0x460] ss:$24 sps:$4 sm:$0xff]   ;;  %v3814_v0 = vld [vmem:[#allocation5 + $0x430] ss:$24 sps:$4 sm:$0xff]  }
  0xd1   :  { %2182 = vmatprep.subr.bf16.mxu1 %v3735_v63  ;;  %v3819_v63 = vld [vmem:[#allocation5 + $0x74] ss:$24 sps:$4 sm:$0xff]  }
  0xd3   :  { %2146 = vmatpush1.bf16.msra.mxu0 %v3736_v2  ;;  %v3822_v2 = vld [vmem:[#allocation5 + $0x404] ss:$24 sps:$4 sm:$0xff]  }
  0xd4   :  { %2183 = vmatpush1.bf16.msra.mxu1 %v3733_v1  ;;  %2147 = vmatprep.subr.bf16.mxu0 %v3744_v5  ;;  %v3817_v1 = vld [vmem:[#allocation5 + $0x70] ss:$24 sps:$4 sm:$0xff]   ;;  %v3820_v5 = vld [vmem:[#allocation5 + $0x400] ss:$24 sps:$4 sm:$0xff]  }
  0xd5   :  { %2184 = vmatprep.subr.bf16.mxu1 %v3741_v4  ;;  %v3825_v4 = vld [vmem:[#allocation5 + $0x44] ss:$24 sps:$4 sm:$0xff]  }
  0xd7   :  { %2148 = vmatpush2.bf16.msra.mxu0 %v3742_v7  ;;  %v3828_v7 = vld [vmem:[#allocation5 + $0x3d4] ss:$24 sps:$4 sm:$0xff]  }
  0xd8   :  { %2185 = vmatpush1.bf16.msra.mxu1 %v3739_v6  ;;  %2149 = vmatprep.subr.bf16.mxu0 %v3750_v9  ;;  %v3823_v6 = vld [vmem:[#allocation5 + $0x40] ss:$24 sps:$4 sm:$0xff]   ;;  %v3826_v9 = vld [vmem:[#allocation5 + $0x3d0] ss:$24 sps:$4 sm:$0xff]  }
  0xd9   :  { %2186 = vmatprep.subr.bf16.mxu1 %v3747_v8  ;;  %v3831_v8 = vld [vmem:[#allocation5 + $0x14] ss:$24 sps:$4 sm:$0xff]  }
  0xdb   :  { %2150 = vmatpush2.bf16.msra.mxu0 %v3748_v11  ;;  %v3834_v11 = vld [vmem:[#allocation5 + $0x3a4] ss:$24 sps:$4 sm:$0xff]  }
  0xdc   :  { %2187 = vmatpush1.bf16.msra.mxu1 %v3745_v10  ;;  %2151 = vmatprep.subr.bf16.mxu0 %v3756_v14  ;;  %v3829_v10 = vld [vmem:[#allocation5 + $0x10] ss:$24 sps:$4 sm:$0xff]   ;;  %v3832_v14 = vld [vmem:[#allocation5 + $0x3a0] ss:$24 sps:$4 sm:$0xff]  }
  0xdd   :  { %2188 = vmatprep.subr.bf16.mxu1 %v3753_v12  ;;  %v3837_v12 = vld [vmem:[#allocation5 + $0x2e4] ss:$24 sps:$4 sm:$0xff]  }
  0xdf   :  { %2152 = vmatpush2.bf16.msra.mxu0 %v3754_v16  ;;  %v3840_v16 = vld [vmem:[#allocation5 + $0x374] ss:$24 sps:$4 sm:$0xff]  }
  0xe0   :  { %2189 = vmatpush2.bf16.msra.mxu1 %v3751_v15  ;;  %2153 = vmatprep.subr.bf16.mxu0 %v3762_v18  ;;  %v3835_v15 = vld [vmem:[#allocation5 + $0x2e0] ss:$24 sps:$4 sm:$0xff]   ;;  %v3841_v18 = vld [vmem:[#allocation5 + $0x2b0] ss:$24 sps:$4 sm:$0xff]  }
  0xe1   :  { %2190 = vmatprep.subr.bf16.mxu1 %v3759_v17  ;;  %v3843_v17 = vld [vmem:[#allocation5 + $0x2b4] ss:$24 sps:$4 sm:$0xff]  }
  0xe3   :  { %2154 = vmatpush2.bf16.msra.mxu0 %v3760_v22  ;;  %v3849_v22 = vld [vmem:[#allocation5 + $0x284] ss:$24 sps:$4 sm:$0xff]  }
  0xe4   :  { %2191 = vmatpush2.bf16.msra.mxu1 %v3757_v21  ;;  %2155 = vmatprep.subr.bf16.mxu0 %v3768_v24  ;;  %v3846_v21 = vld [vmem:[#allocation5 + $0x344] ss:$24 sps:$4 sm:$0xff]   ;;  %v3847_v24 = vld [vmem:[#allocation5 + $0x280] ss:$24 sps:$4 sm:$0xff]  }
  0xe5   :  { %2192 = vmatprep.subr.bf16.mxu1 %v3765_v23  ;;  %v3844_v23 = vld [vmem:[#allocation5 + $0x340] ss:$24 sps:$4 sm:$0xff]  }
  0xe7   :  { %2156 = vmatpush2.bf16.msra.mxu0 %v3766_v27  ;;  %v3855_v27 = vld [vmem:[#allocation5 + $0x254] ss:$24 sps:$4 sm:$0xff]  }
  0xe8   :  { %2193 = vmatpush2.bf16.msra.mxu1 %v3763_v25  ;;  %2157 = vmatprep.subr.bf16.mxu0 %v3774_v30  ;;  %v3852_v25 = vld [vmem:[#allocation5 + $0x314] ss:$24 sps:$4 sm:$0xff]   ;;  %v3853_v30 = vld [vmem:[#allocation5 + $0x250] ss:$24 sps:$4 sm:$0xff]  }
  0xe9   :  { %2194 = vmatprep.subr.bf16.mxu1 %v3771_v28  ;;  %v3850_v28 = vld [vmem:[#allocation5 + $0x310] ss:$24 sps:$4 sm:$0xff]  }
  0xeb   :  { %2158 = vmatpush2.bf16.msra.mxu0 %v3772_v33  ;;  %v3861_v33 = vld [vmem:[#allocation5 + $0x224] ss:$24 sps:$4 sm:$0xff]  }
  0xec   :  { %2195 = vmatpush2.bf16.msra.mxu1 %v3769_v32  ;;  %2159 = vmatprep.subr.bf16.mxu0 %v3780_v36  ;;  %v3858_v32 = vld [vmem:[#allocation5 + $0x5e4] ss:$24 sps:$4 sm:$0xff]   ;;  %v3859_v36 = vld [vmem:[#allocation5 + $0x220] ss:$24 sps:$4 sm:$0xff]  }
  0xed   :  { %2196 = vmatprep.subr.bf16.mxu1 %v3777_v35  ;;  %v3856_v35 = vld [vmem:[#allocation5 + $0x5e0] ss:$24 sps:$4 sm:$0xff]  }
  0xef   :  { %2160 = vmatpush2.bf16.msra.mxu0 %v3778_v38  ;;  %v3867_v38 = vld [vmem:[#allocation5 + $0x1f4] ss:$24 sps:$4 sm:$0xff]  }
  0xf0   :  { %2197 = vmatpush2.bf16.msra.mxu1 %v3775_v37  ;;  %2161 = vmatprep.subr.bf16.mxu0 %v3786_v40  ;;  %v3864_v37 = vld [vmem:[#allocation5 + $0x5b4] ss:$24 sps:$4 sm:$0xff]   ;;  %v3865_v40 = vld [vmem:[#allocation5 + $0x1f0] ss:$24 sps:$4 sm:$0xff]  }
  0xf1   :  { %2198 = vmatprep.subr.bf16.mxu1 %v3783_v39  ;;  %v3862_v39 = vld [vmem:[#allocation5 + $0x5b0] ss:$24 sps:$4 sm:$0xff]  }
  0xf3   :  { %2162 = vmatpush2.bf16.msra.mxu0 %v3784_v42  ;;  %v3873_v42 = vld [vmem:[#allocation5 + $0x1c4] ss:$24 sps:$4 sm:$0xff]  }
  0xf4   :  { %2199 = vmatpush2.bf16.msra.mxu1 %v3781_v41  ;;  %2254 = vmatprep.subr.bf16.mxu0 %v3792_v44  ;;  %v3870_v41 = vld [vmem:[#allocation5 + $0x584] ss:$24 sps:$4 sm:$0xff]   ;;  %v3871_v44 = vld [vmem:[#allocation5 + $0x1c0] ss:$24 sps:$4 sm:$0xff]  }
  0xf5   :  { %2200 = vmatprep.subr.bf16.mxu1 %v3789_v13  ;;  %v3868_v13 = vld [vmem:[#allocation5 + $0x580] ss:$24 sps:$4 sm:$0xff]  }
  0xf6   :  { %2164 = vmatmul.mubr.bf16.vlgmr.msra.gmra.mxu0 %v4229_v20 }
  0xf7   :  { %2255 = vmatpush1.bf16.msra.mxu0 %v3790_v46  ;;  %2286 = vmatprep.mubr.bf16.mxu0 %v4216_v62  ;;  %v3811_v62 = vld [vmem:[#allocation5 + $0xa0] ss:$24 sps:$4 sm:$0xff]   ;;  %v3879_v46 = vld [vmem:[#allocation5 + $0x194] ss:$24 sps:$4 sm:$0xff]  }
  0xf8   :  { %2201 = vmatpush2.bf16.msra.mxu1 %v3787_v45  ;;  %2256 = vmatprep.subr.bf16.mxu0 %v3798_v48  ;;  %v3876_v45 = vld [vmem:[#allocation5 + $0x554] ss:$24 sps:$4 sm:$0xff]   ;;  %v3877_v48 = vld [vmem:[#allocation5 + $0x190] ss:$24 sps:$4 sm:$0xff]  }
  0xf9   :  { %2202 = vmatprep.subr.bf16.mxu1 %v3795_v47  ;;  %v3874_v47 = vld [vmem:[#allocation5 + $0x550] ss:$24 sps:$4 sm:$0xff]  }
  0xfb   :  { %2257 = vmatpush1.bf16.msra.mxu0 %v3796_v51  ;;  %v3885_v51 = vld [vmem:[#allocation5 + $0x764] ss:$24 sps:$4 sm:$0xff]  }
  0xfc   :  { %2203 = vmatpush2.bf16.msra.mxu1 %v3793_v50  ;;  %2258 = vmatprep.subr.bf16.mxu0 %v3801_v52  ;;  %v3882_v50 = vld [vmem:[#allocation5 + $0x524] ss:$24 sps:$4 sm:$0xff]   ;;  %v3880_v52 = vld [vmem:[#allocation5 + $0x520] ss:$24 sps:$4 sm:$0xff]  }
  0xfd   :  { %2227 = vmatprep.subr.bf16.mxu1 %v3804_v53  ;;  %v3883_v53 = vld [vmem:[#allocation5 + $0x760] ss:$24 sps:$4 sm:$0xff]  }
  0xff   :  { %2205 = vmatmul.mubr.bf16.vlgmr.msra.gmra.mxu1 %v4245_v34  ;;  %2259 = vmatpush1.bf16.msra.mxu0 %v3799_v54  ;;  %v3888_v54 = vld [vmem:[#allocation5 + $0x4f4] ss:$24 sps:$4 sm:$0xff]  }
 0x100   :  { %2228 = vmatpush1.bf16.msra.mxu1 %v3802_v55  ;;  %2260 = vmatprep.subr.bf16.mxu0 %v3807_v56  ;;  %v3891_v55 = vld [vmem:[#allocation5 + $0x734] ss:$24 sps:$4 sm:$0xff]  }
 0x101   :  { %2245 = vmatprep.mubr.bf16.mxu1 %v4152_v29  ;;  %2295 = vmatprep.subr.bf16.mxu1 %v3810_v57 }
 0x103   :  { %2261 = vmatpush1.bf16.msra.mxu0 %v3805_v58  ;;  %v3886_v58 = vld [vmem:[#allocation5 + $0x4f0] ss:$24 sps:$4 sm:$0xff]  }
 0x104   :  { %2262 = vmatprep.subr.bf16.mxu0 %v3813_v59  ;;  %v3889_v59 = vld [vmem:[#allocation5 + $0x730] ss:$24 sps:$4 sm:$0xff]  }
 0x107   :  { %3369 = vmatmul.mubr.msk.bf16.vlgmr.msra.gmra.mxu1 %vm1922_vm0, %v4238_v31  ;;  %2263 = vmatpush1.bf16.msra.mxu0 %v3811_v62 }
 0x108   :  { %2296 = vmatpush1.bf16.msra.mxu1 %v3808_v60  ;;  %2264 = vmatprep.subr.bf16.mxu0 %v3819_v63  ;;  %v3897_v63 = vld [vmem:[#allocation5 + $0x704] ss:$24 sps:$4 sm:$0xff]  }
 0x109   :  { %2297 = vmatprep.subr.bf16.mxu1 %v3816_v61  ;;  %2327 = vmatprep.mubr.bf16.mxu1 %v4218_v3  ;;  %v3838_v3 = vld [vmem:[#allocation5 + $0x370] ss:$24 sps:$4 sm:$0xff]   ;;  %v3894_v61 = vld [vmem:[#allocation5 + $0x4c4] ss:$24 sps:$4 sm:$0xff]  }
 0x10b   :  { %2265 = vmatpush1.bf16.msra.mxu0 %v3817_v1 }
 0x10c   :  { %2298 = vmatpush1.bf16.msra.mxu1 %v3814_v0  ;;  %2266 = vmatprep.subr.bf16.mxu0 %v3825_v4 }
 0x10d   :  { %2299 = vmatprep.subr.bf16.mxu1 %v3822_v2  ;;  %v3895_v2 = vld [vmem:[#allocation5 + $0x700] ss:$24 sps:$4 sm:$0xff]  }
 0x10f   :  { %2267 = vmatpush1.bf16.msra.mxu0 %v3823_v6  ;;  %v3903_v6 = vld [vmem:[#allocation5 + $0x6d4] ss:$24 sps:$4 sm:$0xff]  }
 0x110   :  { %2300 = vmatpush1.bf16.msra.mxu1 %v3820_v5  ;;  %2268 = vmatprep.subr.bf16.mxu0 %v3831_v8  ;;  %v3900_v5 = vld [vmem:[#allocation5 + $0x494] ss:$24 sps:$4 sm:$0xff]  }
 0x111   :  { %2301 = vmatprep.subr.bf16.mxu1 %v3828_v7 }
 0x113   :  { %2269 = vmatpush1.bf16.msra.mxu0 %v3829_v10  ;;  %v3901_v10 = vld [vmem:[#allocation5 + $0x6d0] ss:$24 sps:$4 sm:$0xff]  }
 0x114   :  { %2302 = vmatpush1.bf16.msra.mxu1 %v3826_v9  ;;  %2270 = vmatprep.subr.bf16.mxu0 %v3837_v12  ;;  %v3898_v9 = vld [vmem:[#allocation5 + $0x490] ss:$24 sps:$4 sm:$0xff]  }
 0x115   :  { %2303 = vmatprep.subr.bf16.mxu1 %v3834_v11  ;;  %v3927_v11 = vld [vmem:[#allocation5 + $0x914] ss:$24 sps:$4 sm:$0xff]  }
 0x117   :  { %2271 = vmatpush2.bf16.msra.mxu0 %v3835_v15  ;;  %v3904_v15 = vld [vmem:[#allocation5 + $0x6a0] ss:$24 sps:$4 sm:$0xff]  }
 0x118   :  { %2304 = vmatpush1.bf16.msra.mxu1 %v3832_v14  ;;  %2272 = vmatprep.subr.bf16.mxu0 %v3843_v17  ;;  %v3909_v17 = vld [vmem:[#allocation5 + $0x674] ss:$24 sps:$4 sm:$0xff]  }
 0x119   :  { %2305 = vmatprep.subr.bf16.mxu1 %v3840_v16  ;;  %v3925_v16 = vld [vmem:[#allocation5 + $0x910] ss:$24 sps:$4 sm:$0xff]  }
 0x11b   :  { %2273 = vmatpush2.bf16.msra.mxu0 %v3841_v18  ;;  %v3931_v18 = vld [vmem:[%s4487_s3 + $0x78] sm:$0xff]  }
 0x11c   :  { %2306 = vmatpush1.bf16.msra.mxu1 %v3838_v3  ;;  %2274 = vmatprep.subr.bf16.mxu0 %v3849_v22  ;;  %v3912_v22 = vld [vmem:[#allocation5 + $0x644] ss:$24 sps:$4 sm:$0xff]  }
 0x11d   :  { %2307 = vmatprep.subr.bf16.mxu1 %v3846_v21  ;;  %v3907_v21 = vld [vmem:[#allocation5 + $0x670] ss:$24 sps:$4 sm:$0xff]  }
 0x11f   :  { %2275 = vmatpush2.bf16.msra.mxu0 %v3847_v24  ;;  %v3932_v24 = vld [vmem:[%s4487_s3 + $0x38] sm:$0xff]  }
 0x120   :  { %2308 = vmatpush1.bf16.msra.mxu1 %v3844_v23  ;;  %2276 = vmatprep.subr.bf16.mxu0 %v3855_v27  ;;  %v3910_v23 = vld [vmem:[#allocation5 + $0x640] ss:$24 sps:$4 sm:$0xff]   ;;  %v3913_v27 = vld [vmem:[#allocation5 + $0x610] ss:$24 sps:$4 sm:$0xff]  }
 0x121   :  { %2309 = vmatprep.subr.bf16.mxu1 %v3852_v25  ;;  %v3915_v25 = vld [vmem:[#allocation5 + $0x614] ss:$24 sps:$4 sm:$0xff]  }
 0x123   :  { %2277 = vmatpush2.bf16.msra.mxu0 %v3853_v30  ;;  %v3941_v30 = vld [vmem:[%s4487_s3 + $0x68] sm:$0xff]  }
 0x124   :  { %2310 = vmatpush1.bf16.msra.mxu1 %v3850_v28  ;;  %2278 = vmatprep.subr.bf16.mxu0 %v3861_v33  ;;  %v3918_v28 = vld [vmem:[#allocation5 + $0x8e4] ss:$24 sps:$4 sm:$0xff]   ;;  %v3921_v33 = vld [vmem:[#allocation5 + $0x8b4] ss:$24 sps:$4 sm:$0xff]  }
 0x125   :  { %2311 = vmatprep.subr.bf16.mxu1 %v3858_v32  ;;  %v3916_v32 = vld [vmem:[#allocation5 + $0x8e0] ss:$24 sps:$4 sm:$0xff]  }
 0x127   :  { %2279 = vmatpush2.bf16.msra.mxu0 %v3859_v36  ;;  %v3919_v36 = vld [vmem:[#allocation5 + $0x8b0] ss:$24 sps:$4 sm:$0xff]  }
 0x128   :  { %2312 = vmatpush2.bf16.msra.mxu1 %v3856_v35  ;;  %2280 = vmatprep.subr.bf16.mxu0 %v3867_v38  ;;  %v3946_v35 = vld [vmem:[%s4487_s3 + $0x60] sm:$0xff]   ;;  %v3924_v38 = vld [vmem:[#allocation5 + $0x884] ss:$24 sps:$4 sm:$0xff]  }
 0x129   :  { %2313 = vmatprep.subr.bf16.mxu1 %v3864_v37  ;;  %v3947_v37 = vld [vmem:[%s4487_s3 + $0x20] sm:$0xff]  }
 0x12b   :  { %2281 = vmatpush2.bf16.msra.mxu0 %v3865_v40  ;;  %v3922_v40 = vld [vmem:[#allocation5 + $0x880] ss:$24 sps:$4 sm:$0xff]  }
 0x12c   :  { %2314 = vmatpush2.bf16.msra.mxu1 %v3862_v39  ;;  %2282 = vmatprep.subr.bf16.mxu0 %v3873_v42  ;;  %v3951_v39 = vld [vmem:[%s4487_s3 + $0x58] sm:$0xff]  }
 0x12d   :  { %2315 = vmatprep.subr.bf16.mxu1 %v3870_v41  ;;  %v3952_v41 = vld [vmem:[%s4487_s3 + $0x18] sm:$0xff]  }
 0x12e   :  { %v3930_v42 = vld [vmem:[#allocation5 + $0x854] ss:$24 sps:$4 sm:$0xff]  }
 0x12f   :  { %2283 = vmatpush2.bf16.msra.mxu0 %v3871_v44  ;;  %v3928_v44 = vld [vmem:[#allocation5 + $0x850] ss:$24 sps:$4 sm:$0xff]  }
 0x130   :  { %2316 = vmatpush2.bf16.msra.mxu1 %v3868_v13  ;;  %2284 = vmatprep.subr.bf16.mxu0 %v3879_v46  ;;  %v3953_v13 = vld [vmem:[%s4487_s3 + $0x50] sm:$0xff]  }
 0x131   :  { %2317 = vmatprep.subr.bf16.mxu1 %v3876_v45  ;;  %v3954_v45 = vld [vmem:[%s4487_s3 + $0x10] sm:$0xff]  }
 0x132   :  { %v3935_v46 = vld [vmem:[#allocation5 + $0x824] ss:$24 sps:$4 sm:$0xff]  }
 0x133   :  { %2285 = vmatpush2.bf16.msra.mxu0 %v3877_v48  ;;  %v3933_v48 = vld [vmem:[#allocation5 + $0x820] ss:$24 sps:$4 sm:$0xff]  }
 0x134   :  { %2318 = vmatpush2.bf16.msra.mxu1 %v3874_v47  ;;  %2336 = vmatprep.subr.bf16.mxu0 %v3885_v51  ;;  %v3955_v47 = vld [vmem:[%s4487_s3 + $0x48] sm:$0xff]   ;;  %v3940_v51 = vld [vmem:[#allocation5 + $0x7f4] ss:$24 sps:$4 sm:$0xff]  }
 0x135   :  { %2319 = vmatprep.subr.bf16.mxu1 %v3882_v50  ;;  %v3956_v50 = vld [vmem:[%s4487_s3 + $0x8] sm:$0xff]  }
 0x136   :  { %v4258_v56 = vpop.f32.mrf.mxu0  ;;  %2287 = vmatmul.mubr.bf16.vlgmr.msra.gmra.mxu0 %v4227_v19  ;;  %v3892_v19 = vld [vmem:[#allocation5 + $0x4c0] ss:$24 sps:$4 sm:$0xff]  }
 0x137   :  { %v4261_v57 = vpop.f32.mrf.mxu1  ;;  %2337 = vmatpush1.bf16.msra.mxu0 %v3883_v53  ;;  %2368 = vmatprep.mubr.bf16.mxu0 %v4231_v26  ;;  %v3906_v26 = vld [vmem:[#allocation5 + $0x6a4] ss:$24 sps:$4 sm:$0xff]   ;;  %v3938_v53 = vld [vmem:[#allocation5 + $0x7f0] ss:$24 sps:$4 sm:$0xff]  }
 0x138   :  { %2320 = vmatpush2.bf16.msra.mxu1 %v3880_v52  ;;  %v4263_v60 = vpop.f32.mrf.mxu0  ;;  %2338 = vmatprep.subr.bf16.mxu0 %v3891_v55  ;;  %v3957_v52 = vld [vmem:[%s4487_s3 + $0x40] sm:$0xff]   ;;  %v3945_v55 = vld [vmem:[#allocation5 + $0x7c4] ss:$24 sps:$4 sm:$0xff]  }
 0x139   :  { %2321 = vmatprep.subr.bf16.mxu1 %v3888_v54  ;;  %v4265_v62 = vpop.f32.mrf.mxu1  ;;  %v3958_v54 = vld [vmem:[%s4487_s3] sm:$0xff]  }
 0x13a   :  { %v1964_v0 = vpop.f32.mrf.mxu0 }
 0x13b   :  { %v2005_v1 = vpop.f32.mrf.mxu1  ;;  %2339 = vmatpush1.bf16.msra.mxu0 %v3889_v59  ;;  %v424_v59 = vsub.s32 0, %v4209_v43  ;;  %v3943_v0 = vld [vmem:[#allocation5 + $0x7c0] ss:$24 sps:$4 sm:$0xff]  }
 0x13c   :  { %2322 = vmatpush2.bf16.msra.mxu1 %v3886_v58  ;;  %v1965_v4 = vpop.f32.mrf.mxu0  ;;  %2340 = vmatprep.subr.bf16.mxu0 %v3897_v63  ;;  %v3959_v58 = vld [vmem:[%s4487_s3 + $0xf8] sm:$0xff]   ;;  %v428_v63 = vsub.s32 1, %v4209_v43 }
 0x13d   :  { %2323 = vmatprep.subr.bf16.mxu1 %v3894_v61  ;;  %v2006_v7 = vpop.f32.mrf.mxu1  ;;  %v4328_v61 = vld [vmem:[#allocation7] sm:$0x3f] }
 0x13e   :  { %v3950_v1 = vld [vmem:[#allocation5 + $0x794] ss:$24 sps:$4 sm:$0xff]   ;;  %v3948_v4 = vld [vmem:[#allocation5 + $0x790] ss:$24 sps:$4 sm:$0xff]  }
 0x13f   :  { %v4268_v8 = vpop.f32.mrf.mxu1  ;;  %2341 = vmatpush1.bf16.msra.mxu0 %v3895_v2  ;;  %v429_v2 = vrot.slane %v4328_v61, %v428_v63  ;;  %v3988_v63 = vld [vmem:[%s4487_s3 + $0x108] sm:$0xff]  }
 0x140   :  { %2324 = vmatpush2.bf16.msra.mxu1 %v3892_v19  ;;  %2342 = vmatprep.subr.bf16.mxu0 %v3903_v6  ;;  %v425_v19 = vrot.slane %v4328_v61, %v424_v59  ;;  %v436_v59 = vsub.s32 3, %v4209_v43 }
 0x141   :  { %2325 = vmatprep.subr.bf16.mxu1 %v3900_v5  ;;  %v4270_v12 = vpop.f32.mrf.mxu1  ;;  %v1963_v6 = vadd.f32 %v4263_v60, %v429_v2  ;;  %v3989_v2 = vld [vmem:[%s4487_s3 + $0x140] sm:$0xff]  }
 0x142   :  { %v1961_v5 = vadd.f32 %v4258_v56, %v425_v19 }
 0x143   :  { %v2087_v14 = vpop.f32.mrf.mxu1  ;;  %2343 = vmatpush1.bf16.msra.mxu0 %v3901_v10  ;;  %v2004_v10 = vadd.f32 %v4265_v62, %v1963_v6 }
 0x144   :  { %2326 = vmatpush2.bf16.msra.mxu1 %v3898_v9  ;;  %2344 = vmatprep.subr.bf16.mxu0 %v3906_v26  ;;  %v2002_v7 = vadd.f32 %v4261_v57, %v1961_v5  ;;  %v3990_v5 = vld [vmem:[%s4487_s3 + $0x100] sm:$0xff]  }
 0x145   :  { %2391 = vmatprep.subr.bf16.mxu1 %v3927_v11  ;;  %v2088_v3 = vpop.f32.mrf.mxu1 }
 0x147   :  { %2328 = vmatmul.mubr.bf16.vlgmr.msra.gmra.mxu1 %v4229_v20  ;;  %2345 = vmatpush1.bf16.msra.mxu0 %v3904_v15  ;;  %v3936_v20 = vld [vmem:[%s4487_s3 + $0x70] sm:$0xff]  }
 0x148   :  { %2392 = vmatpush1.bf16.msra.mxu1 %v3925_v16  ;;  %2346 = vmatprep.subr.bf16.mxu0 %v3909_v17 }
 0x149   :  { %2409 = vmatprep.mubr.bf16.mxu1 %v4152_v29  ;;  %3422 = vmatprep.subr.bf16.mxu1 %v3931_v18  ;;  %v3937_v29 = vld [vmem:[%s4487_s3 + $0x30] sm:$0xff]  }
 0x14b   :  { %2347 = vmatpush1.bf16.msra.mxu0 %v3907_v21 }
 0x14c   :  { %2348 = vmatprep.subr.bf16.mxu0 %v3912_v22  ;;  %v3961_v22 = vld [vmem:[%s4487_s3 + $0xf0] sm:$0xff]  }
 0x14f   :  { %3370 = vmatmul.mubr.msk.bf16.vlgmr.msra.gmra.mxu1 %vm1922_vm0, %v4238_v31  ;;  %2349 = vmatpush1.bf16.msra.mxu0 %v3910_v23  ;;  %v3942_v31 = vld [vmem:[%s4487_s3 + $0x28] sm:$0xff]  }
 0x150   :  { %3423 = vmatpush3.bf16.msra.mxu1 %v3932_v24  ;;  %2350 = vmatprep.subr.bf16.mxu0 %v3915_v25  ;;  %v3962_v24 = vld [vmem:[%s4487_s3 + $0xb0] sm:$0xff]  }
 0x151   :  { %3424 = vmatprep.subr.bf16.mxu1 %v3936_v20  ;;  %v3963_v20 = vld [vmem:[%s4487_s3 + $0xe8] sm:$0xff]  }
 0x153   :  { %2351 = vmatpush1.bf16.msra.mxu0 %v3913_v27  ;;  %v3964_v27 = vld [vmem:[%s4487_s3 + $0xa8] sm:$0xff]  }
 0x154   :  { %3425 = vmatpush3.bf16.msra.mxu1 %v3937_v29  ;;  %2352 = vmatprep.subr.bf16.mxu0 %v3918_v28  ;;  %v3965_v29 = vld [vmem:[%s4487_s3 + $0xe0] sm:$0xff]   ;;  %v3975_v28 = vld [vmem:[%s4487_s3 + $0x178] sm:$0xff]  }
 0x155   :  { %3426 = vmatprep.subr.bf16.mxu1 %v3941_v30  ;;  %v3976_v30 = vld [vmem:[%s4487_s3 + $0x138] sm:$0xff]  }
 0x157   :  { %2353 = vmatpush2.bf16.msra.mxu0 %v3916_v32  ;;  %v3977_v32 = vld [vmem:[%s4487_s3 + $0x170] sm:$0xff]  }
 0x158   :  { %3427 = vmatpush3.bf16.msra.mxu1 %v3942_v31  ;;  %2354 = vmatprep.subr.bf16.mxu0 %v3921_v33  ;;  %v3966_v31 = vld [vmem:[%s4487_s3 + $0xa0] sm:$0xff]   ;;  %v3967_v33 = vld [vmem:[%s4487_s3 + $0xd8] sm:$0xff]  }
 0x159   :  { %3428 = vmatprep.subr.bf16.mxu1 %v3946_v35  ;;  %v3978_v35 = vld [vmem:[%s4487_s3 + $0x130] sm:$0xff]  }
 0x15b   :  { %2355 = vmatpush2.bf16.msra.mxu0 %v3919_v36  ;;  %v3979_v36 = vld [vmem:[%s4487_s3 + $0x168] sm:$0xff]  }
 0x15c   :  { %3429 = vmatpush3.bf16.msra.mxu1 %v3947_v37  ;;  %2356 = vmatprep.subr.bf16.mxu0 %v3924_v38  ;;  %v3968_v37 = vld [vmem:[%s4487_s3 + $0x98] sm:$0xff]   ;;  %v3969_v38 = vld [vmem:[%s4487_s3 + $0xd0] sm:$0xff]  }
 0x15d   :  { %3430 = vmatprep.subr.bf16.mxu1 %v3951_v39  ;;  %v3980_v39 = vld [vmem:[%s4487_s3 + $0x128] sm:$0xff]  }
 0x15f   :  { %2357 = vmatpush2.bf16.msra.mxu0 %v3922_v40  ;;  %v3981_v40 = vld [vmem:[%s4487_s3 + $0x160] sm:$0xff]  }
 0x160   :  { %3431 = vmatpush3.bf16.msra.mxu1 %v3952_v41  ;;  %2358 = vmatprep.subr.bf16.mxu0 %v3930_v42  ;;  %v3970_v41 = vld [vmem:[%s4487_s3 + $0x90] sm:$0xff]   ;;  %v3971_v42 = vld [vmem:[%s4487_s3 + $0xc8] sm:$0xff]  }
 0x161   :  { %3432 = vmatprep.subr.bf16.mxu1 %v3953_v13  ;;  %v3982_v13 = vld [vmem:[%s4487_s3 + $0x120] sm:$0xff]  }
 0x163   :  { %2359 = vmatpush2.bf16.msra.mxu0 %v3928_v44  ;;  %v3983_v44 = vld [vmem:[%s4487_s3 + $0x158] sm:$0xff]  }
 0x164   :  { %3433 = vmatpush3.bf16.msra.mxu1 %v3954_v45  ;;  %2360 = vmatprep.subr.bf16.mxu0 %v3935_v46  ;;  %v3972_v45 = vld [vmem:[%s4487_s3 + $0x88] sm:$0xff]   ;;  %v3973_v46 = vld [vmem:[%s4487_s3 + $0xc0] sm:$0xff]  }
 0x165   :  { %3434 = vmatprep.subr.bf16.mxu1 %v3955_v47  ;;  %v3984_v47 = vld [vmem:[%s4487_s3 + $0x118] sm:$0xff]  }
 0x167   :  { %2361 = vmatpush2.bf16.msra.mxu0 %v3933_v48  ;;  %v3974_v48 = vld [vmem:[%s4487_s3 + $0x80] sm:$0xff]  }
 0x168   :  { %3435 = vmatpush3.bf16.msra.mxu1 %v3956_v50  ;;  %2362 = vmatprep.subr.bf16.mxu0 %v3940_v51  ;;  %v3985_v51 = vld [vmem:[%s4487_s3 + $0x150] sm:$0xff]  }
 0x169   :  { %3436 = vmatprep.subr.bf16.mxu1 %v3957_v52  ;;  %v3986_v52 = vld [vmem:[%s4487_s3 + $0x110] sm:$0xff]  }
 0x16b   :  { %2363 = vmatpush2.bf16.msra.mxu0 %v3938_v53 }
 0x16c   :  { %3437 = vmatpush3.bf16.msra.mxu1 %v3958_v54  ;;  %2364 = vmatprep.subr.bf16.mxu0 %v3945_v55  ;;  %v432_v54 = vsub.s32 2, %v4209_v43 }
 0x16d   :  { %3444 = vmatprep.subr.bf16.mxu1 %v3959_v58  ;;  %v3987_v58 = vld [vmem:[%s4487_s3 + $0x148] sm:$0xff]  }
 0x16f   :  { %2365 = vmatpush2.bf16.msra.mxu0 %v3943_v0 }
 0x170   :  { %2366 = vmatprep.subr.bf16.mxu0 %v3950_v1  ;;  %v433_v1 = vrot.slane %v4328_v61, %v432_v54 }
 0x173   :  { %2367 = vmatpush2.bf16.msra.mxu0 %v3948_v4  ;;  %v437_v4 = vrot.slane %v4328_v61, %v436_v59 }
 0x174   :  { %3466 = vmatprep.subr.bf16.mxu0 %v3975_v28 }
 0x176   :  { %v2042_v9 = vpop.f32.mrf.mxu0  ;;  %2369 = vmatmul.mubr.bf16.vlgmr.msra.gmra.mxu0 %v4245_v34 }
 0x177   :  { %v2043_v26 = vadd.f32 %v2042_v9, %v2002_v7  ;;  %3467 = vmatpush3.bf16.msra.mxu0 %v3976_v30 }
 0x178   :  { %v2044_v11 = vpop.f32.mrf.mxu0  ;;  %3468 = vmatprep.subr.bf16.mxu0 %v3977_v32 }
 0x179   :  { %v4339_v14 = vadd.f32 %v4268_v8, %v2043_v26  ;;  %v2045_v15 = vadd.f32 %v2044_v11, %v2004_v10 }
 0x17a   :  { %v2046_v16 = vpop.f32.mrf.mxu0 }
 0x17b   :  { %v4342_v17 = vadd.f32 %v4270_v12, %v2045_v15  ;;  %v4345_v56 = vmax.f32 %v4339_v14, 0.0  ;;  %v3960_v12 = vld [vmem:[%s4487_s3 + $0xb8] sm:$0xff]   ;;  %3469 = vmatpush3.bf16.msra.mxu0 %v3978_v35  ;;  %s4153_s3 = smov [#allocation11]  }
 0x17c   :  { %v2047_v60 = vpop.f32.mrf.mxu0  ;;  %3470 = vmatprep.subr.bf16.mxu0 %v3979_v36  ;;  %s3046_s12 = sshll.u32 %s4153_s3, 4  ;;  %s3047_s12 = int_to_ptr.vmem [resolvable:$true] %s3046_s12 }
 0x17d   :  { %v2424_v57 = vcombine.low %v4339_v14, %v4342_v17  ;;  %v4350_v34 = vmax.f32 %v4342_v17, 0.0  ;;  %v2494_v18 = vpack.c.bf16 %v4345_v56, %v4345_v56  ;;  %s4075_s13 = scalar_lea.vmem %s3047_s12, 192  ;;  %p4080_p7 = scmp.lt.s32.totalorder %s3047_s12, %s3047_s12 }
 0x17e   :  { %p4076_p6 = scmp.ne.s32.totalorder %s3047_s12, %s4075_s13  ;;  %p4081_p8 = scmp.lt.s32.totalorder %s4075_s13, %s4075_s13 }
 0x17f   :  { %v4352_v62 = vpop.f32.mrf.mxu1  ;;  %v2465_v8 = vcombine.low %v4345_v56, %v4350_v34  ;;  %v2495_v3 = vpack.c.bf16 %v4350_v34, %v4350_v34  ;;  %3471 = vmatpush3.bf16.msra.mxu0 %v3980_v39 }
 0x180   :  { %3472 = vmatprep.subr.bf16.mxu0 %v3981_v40  ;;  %v2125_v7 = vadd.f32 %v4352_v62, %v433_v1  ;;  %v2432_v62 = vrot.slane %v2424_v57, %v4212_v49  ;;  %p4082_p9 = por %p4081_p8, %p4080_p7 }
 0x181   :  { %v4363_v21 = vpop.f32.mrf.mxu1  ;;  %2923 = vmatprep.mubr.bf16.mxu1 %v2495_v3  ;;  %v2473_v32 = vrot.slane %v2465_v8, %v4212_v49  ;;  %v444_v8 = vsub.s32 5, %v4209_v43 }
 0x182   :  { %2924 = vmatmul.mubr.bf16.vlgmr.msra.gmra.mxu1 %v2494_v18  ;;  %v2127_v10 = vadd.f32 %v4363_v21, %v437_v4  ;;  %p4083_p10 = pnand %p4082_p9, %p4076_p6 }
 0x183   :  { %v2128_v23 = vpop.f32.mrf.mxu1  ;;  %3445 = vmatpush3.bf16.msra.mxu1 %v3960_v12  ;;  %3473 = vmatpush3.bf16.msra.mxu0 %v3982_v13 }
 0x184   :  { %3446 = vmatprep.subr.bf16.mxu1 %v3961_v22  ;;  %3474 = vmatprep.subr.bf16.mxu0 %v3983_v44  ;;  %v445_v44 = vrot.slane %v4328_v61, %v444_v8 }
 0x185   :  { %v2129_v25 = vpop.f32.mrf.mxu1 }
 0x187   :  { %3447 = vmatpush3.bf16.msra.mxu1 %v3962_v24  ;;  %3475 = vmatpush3.bf16.msra.mxu0 %v3984_v47 }
 0x188   :  { %3448 = vmatprep.subr.bf16.mxu1 %v3963_v20  ;;  %3476 = vmatprep.subr.bf16.mxu0 %v3985_v51 }
 0x18b   :  { %3449 = vmatpush3.bf16.msra.mxu1 %v3964_v27  ;;  %3477 = vmatpush3.bf16.msra.mxu0 %v3986_v52 }
 0x18c   :  { %3450 = vmatprep.subr.bf16.mxu1 %v3965_v29  ;;  %3478 = vmatprep.subr.bf16.mxu0 %v3987_v58 }
 0x18f   :  { %3451 = vmatpush3.bf16.msra.mxu1 %v3966_v31  ;;  %3479 = vmatpush3.bf16.msra.mxu0 %v3988_v63 }
 0x190   :  { %3452 = vmatprep.subr.bf16.mxu1 %v3967_v33  ;;  %3480 = vmatprep.subr.bf16.mxu0 %v3989_v2 }
 0x193   :  { %3453 = vmatpush3.bf16.msra.mxu1 %v3968_v37  ;;  %3481 = vmatpush3.bf16.msra.mxu0 %v3990_v5 }
 0x194   :  { %3454 = vmatprep.subr.bf16.mxu1 %v3969_v38 }
 0x197   :  { %3455 = vmatpush3.bf16.msra.mxu1 %v3970_v41 }
 0x198   :  { %3456 = vmatprep.subr.bf16.mxu1 %v3971_v42 }
 0x19b   :  { %3457 = vmatpush3.bf16.msra.mxu1 %v3972_v45 }
 0x19c   :  { %3458 = vmatprep.subr.bf16.mxu1 %v3973_v46 }
 0x19f   :  { %3459 = vmatpush3.bf16.msra.mxu1 %v3974_v48 }
 0x1b6   :  { %v2165_v50 = vpop.f32.mrf.mxu0 }
 0x1b7   :  { %v2166_v26 = vadd.f32 %v2165_v50, %v2125_v7 }
 0x1b8   :  { %v2167_v53 = vpop.f32.mrf.mxu0 }
 0x1b9   :  { %v2168_v15 = vadd.f32 %v2167_v53, %v2127_v10 }
 0x1ba   :  { %v2169_v55 = vpop.f32.mrf.mxu0 }
 0x1bc   :  { %v2170_v0 = vpop.f32.mrf.mxu0 }
 0x1bf   :  { %v2206_v19 = vpop.f32.mrf.mxu1 }
 0x1c0   :  { %v2207_v16 = vadd.f32 %v2206_v19, %v2166_v26 }
 0x1c1   :  { %v2208_v6 = vpop.f32.mrf.mxu1 }
 0x1c2   :  { %v2209_v3 = vadd.f32 %v2208_v6, %v2168_v15 }
 0x1c3   :  { %v2210_v9 = vpop.f32.mrf.mxu1 }
 0x1c4   :  { %v3373_v9 = vld [vmem:[#allocation8] ss:$0 sm:$0xff] }
 0x1c5   :  { %v2211_v11 = vpop.f32.mrf.mxu1 }
 0x1c7   :  { %v2247_v60 = vpop.f32.mrf.mxu1 }
 0x1c8   :  { %v2248_v12 = vadd.f32 %v2247_v60, %v2207_v16 }
 0x1c9   :  { %v2249_v18 = vpop.f32.mrf.mxu1 }
 0x1ca   :  { %v2250_v22 = vadd.f32 %v2249_v18, %v2209_v3  ;;  %v2455_v23 = vmax.f32 %v2248_v12, 0.0 }
 0x1cb   :  { %v2251_v24 = vpop.f32.mrf.mxu1 }
 0x1cc   :  { %v2425_v25 = vcombine.low %v2248_v12, %v2250_v22  ;;  %v2456_v20 = vmax.f32 %v2250_v22, 0.0  ;;  %v2496_v30 = vpack.c.bf16 %v2455_v23, %v2455_v23 }
 0x1cd   :  { %v2252_v27 = vpop.f32.mrf.mxu1 }
 0x1ce   :  { %v2439_v21 = vrot.slane %v2425_v25, %v4212_v49  ;;  %v2466_v29 = vcombine.low %v2455_v23, %v2456_v20  ;;  %v2497_v28 = vpack.c.bf16 %v2456_v20, %v2456_v20 }
 0x1d0   :  { %v2480_v31 = vrot.slane %v2466_v29, %v4212_v49  ;;  %2963 = vmatprep.mubr.bf16.mxu1 %v2497_v28  ;;  %v2440_v33 = vcombine.low %v2432_v62, %v2439_v21  ;;  %v440_v49 = vsub.s32 4, %v4209_v43 }
 0x1d1   :  { %2964 = vmatmul.mubr.bf16.vlgmr.msra.gmra.mxu1 %v2496_v30 }
 0x1d2   :  { %2451 = vst [vmem:[#allocation11] sm:$0xff] %v2440_v33  ;;  %v2481_v35 = vcombine.low %v2473_v32, %v2480_v31  ;;  %v441_v13 = vrot.slane %v4328_v61, %v440_v49 }
 0x1d4   :  { %2492 = vst [vmem:[#allocation13] sm:$0xff] %v2481_v35 }
 0x1f6   :  { %v2288_v14 = vpop.f32.mrf.mxu0 }
 0x1f7   :  { %v2289_v45 = vadd.f32 %v2288_v14, %v441_v13 }
 0x1f8   :  { %v2290_v17 = vpop.f32.mrf.mxu0 }
 0x1f9   :  { %v2291_v46 = vadd.f32 %v2290_v17, %v445_v44 }
 0x1fa   :  { %v2292_v57 = vpop.f32.mrf.mxu0 }
 0x1fc   :  { %v2293_v36 = vpop.f32.mrf.mxu0 }
 0x207   :  { %v2329_v37 = vpop.f32.mrf.mxu1 }
 0x208   :  { %v2330_v47 = vadd.f32 %v2329_v37, %v2289_v45 }
 0x209   :  { %v2331_v38 = vpop.f32.mrf.mxu1 }
 0x20a   :  { %v2332_v50 = vadd.f32 %v2331_v38, %v2291_v46 }
 0x20b   :  { %v2333_v39 = vpop.f32.mrf.mxu1 }
 0x20d   :  { %v2334_v40 = vpop.f32.mrf.mxu1 }
 0x20f   :  { %v2411_v41 = vpop.f32.mrf.mxu1 }
 0x211   :  { %v2413_v42 = vpop.f32.mrf.mxu1 }
 0x213   :  { %v2415_v56 = vpop.f32.mrf.mxu1 }
 0x215   :  { %v2416_v34 = vpop.f32.mrf.mxu1 }
 0x236   :  { %v2370_v48 = vpop.f32.mrf.mxu0 }
 0x237   :  { %v2371_v51 = vadd.f32 %v2370_v48, %v2330_v47 }
 0x238   :  { %v2372_v52 = vpop.f32.mrf.mxu0 }
 0x239   :  { %v2412_v53 = vadd.f32 %v2411_v41, %v2371_v51  ;;  %v2373_v54 = vadd.f32 %v2372_v52, %v2332_v50 }
 0x23a   :  { %v2374_v55 = vpop.f32.mrf.mxu0 }
 0x23b   :  { %v2414_v58 = vadd.f32 %v2413_v42, %v2373_v54  ;;  %v2457_v59 = vmax.f32 %v2412_v53, 0.0 }
 0x23c   :  { %v2375_v63 = vpop.f32.mrf.mxu0 }
 0x23d   :  { %v2441_v0 = vcombine.low %v2412_v53, %v2414_v58  ;;  %v2458_v1 = vmax.f32 %v2414_v58, 0.0  ;;  %v2498_v2 = vpack.c.bf16 %v2457_v59, %v2457_v59 }
 0x23f   :  { %v2482_v43 = vcombine.low %v2457_v59, %v2458_v1  ;;  %3371 = vst.sshfl [vmem:[#allocation11 + $0x8] sm:$0x33 pattern:$0x76325410] %v2441_v0  ;;  %v2499_v19 = vpack.c.bf16 %v2458_v1, %v2458_v1 }
 0x241   :  { %3372 = vst.sshfl [vmem:[#allocation13 + $0x8] sm:$0x33 pattern:$0x76325410] %v2482_v43  ;;  %3003 = vmatprep.mubr.bf16.mxu0 %v2499_v19 }
 0x242   :  { %v3438_v61 = vpop.f32.mrf.mxu1  ;;  %3004 = vmatmul.mubr.bf16.vlgmr.msra.gmra.mxu0 %v2498_v2 }
 0x244   :  { %v3439_v4 = vpop.f32.mrf.mxu1 }
 0x245   :  { %v3440_v5 = vadd.f32 %v3439_v4, %v3438_v61 }
 0x246   :  { %v3441_v6 = vpop.f32.mrf.mxu1 }
 0x247   :  { %v2926_v11 = vadd.f32 %v3440_v5, %v3373_v9 }
 0x248   :  { %v3442_v7 = vpop.f32.mrf.mxu1 }
 0x291   :  { %v3460_v10 = vpop.f32.mrf.mxu1 }
 0x293   :  { %v3461_v26 = vpop.f32.mrf.mxu1 }
 0x294   :  { %v3462_v15 = vadd.f32 %v3461_v26, %v3460_v10 }
 0x295   :  { %v3463_v16 = vpop.f32.mrf.mxu1 }
 0x296   :  { %v2966_v60 = vadd.f32 %v3462_v15, %v2926_v11 }
 0x297   :  { %v3464_v3 = vpop.f32.mrf.mxu1 }
 0x302   :  { %v3482_v12 = vpop.f32.mrf.mxu0 }
 0x304   :  { %v3483_v18 = vpop.f32.mrf.mxu0 }
 0x305   :  { %v3484_v22 = vadd.f32 %v3483_v18, %v3482_v12 }
 0x306   :  { %v3485_v23 = vpop.f32.mrf.mxu0 }
 0x307   :  { %v3006_v24 = vadd.f32 %v3484_v22, %v2966_v60 }
 0x308   :  { %v3486_v25 = vpop.f32.mrf.mxu0 }
 0x309   :  { %v3012_v20 = vsel %vm3011_vm1, %v3006_v24, -inf  ;;  %3023 = vst.msk [vmem:[#allocation10] sm:$0x3] %vm3011_vm1, %v3006_v24 }
 0x30a   :  { %3013 = vmax.xlane.f32.xlu0 %v3012_v20 }
 0x393   :  { %v3014_v27 = vpop.xlane.xlu0 %3013 }
 0x394   :  { %v3015_v62 = vsub.f32 %v3006_v24, %v3014_v27 }
 0x396   :  { %v3016_v21 = vmul.f32 1.442695, %v3015_v62 }
 0x398   :  { %3991 = vpow2.f32 %v3016_v21 }
 0x3a5   :  { %v3992_v29 = vpop.eup %3991 }
 0x3a6   :  { %v3018_v28 = vsel %vm3011_vm1, %v3992_v29, 0.0 }
 0x3a7   :  { %3019 = vadd.xlane.f32.xlu0 %v3018_v28 }
 0x430   :  { %v3020_v30 = vpop.xlane.xlu0 %3019 }
 0x431   :  { %3993 = vrcp.f32 %v3020_v30 }
 0x432   :  { %4086 = shalt.err (!%p4083_p10)
}
 0x433   :  { %3049 = dma.vmem_to_hbm [thread:$0]  %s3047_s12, 192, %s4490_s6, [#allocation12]  }
 0x434   :  { %s4154_s1 = smov [#allocation13]  }
 0x435   :  { %s3056_s16 = sshll.u32 %s4154_s1, 4  ;;  %s3057_s16 = int_to_ptr.vmem [resolvable:$true] %s3056_s16 }
 0x436   :  { %s4095_s17 = scalar_lea.vmem %s3057_s16, 192  ;;  %p4100_p12 = scmp.lt.s32.totalorder %s3057_s16, %s3057_s16 }
 0x437   :  { %p4096_p11 = scmp.ne.s32.totalorder %s3057_s16, %s4095_s17  ;;  %p4101_p13 = scmp.lt.s32.totalorder %s4095_s17, %s4095_s17 }
 0x439   :  { %p4102_p0 = por %p4101_p13, %p4100_p12 }
 0x43b   :  { %p4103_p1 = pnand %p4102_p0, %p4096_p11 }
 0x43d   :  { %4106 = shalt.err (!%p4103_p1)
}
 0x43e   :  { %3059 = dma.vmem_to_hbm [thread:$0]  %s3057_s16, 192, %s4491_s7, [#allocation12]   ;;  %v3994_v32 = vpop.eup %3993  ;;  %vm3028_vm2 = vcmask 1041920  }
 0x43f   :  { %v3022_v31 = vmul.f32 %v3994_v32, %v3992_v29  ;;  %s4155_s20 = smov 64   ;;  %s4156_s0 = smov [#allocation10]  }
 0x440   :  { %s3036_s6 = sshll.u32 %s4156_s0, 4  ;;  %s3037_s6 = int_to_ptr.vmem [resolvable:$true] %s3036_s6 }
 0x441   :  { %3025 = vrot.lane.b32.xlu1 %v3022_v31, %s4155_s20  ;;  %s4115_s21 = scalar_lea.vmem %s3037_s6, 32  ;;  %p4120_p3 = scmp.lt.s32.totalorder %s3037_s6, %s3037_s6 }
 0x442   :  { %p4116_p2 = scmp.ne.s32.totalorder %s3037_s6, %s4115_s21  ;;  %p4121_p4 = scmp.lt.s32.totalorder %s4115_s21, %s4115_s21 }
 0x444   :  { %p4122_p5 = por %p4121_p4, %p4120_p3 }
 0x446   :  { %p4123_p6 = pnand %p4122_p5, %p4116_p2 }
 0x4b3   :  { %v3026_v33 = vpop.permute.xlu1 %3025 }
 0x4b4   :  { %3029 = vst.msk [vmem:[#allocation10] sm:$0x3] %vm3028_vm2, %v3026_v33 }
 0x4b5   :  { %4126 = shalt.err (!%p4123_p6)
}
 0x4b6   :  { %3039 = dma.vmem_to_hbm [thread:$0]  %s3037_s6, 32, %s4489_s5, [#allocation4]  }
 0x4b7   :  { %4141 = dma.done.wait [#allocation4], 32  }
 0x4b8   :  { %4142 = vsyncadd [#allocation4], 4294967264 }
 0x4b9   :  { %4143 = dma.done.wait [#allocation12], 384  }
 0x4ba   :  { %4144 = vsyncadd [#allocation12], 4294966912 }
 0x4bb   :  { %3069 = vsyncpa [#allocation3], 1 }
 0x4bc   :  { %3070 = vsyncpa [#allocation6], 1 }
 0x4bd   :  { %3071 = vsyncpa [#allocation9], 1 }
 0x4be   :  { %3072 = vsyncpa [#allocation4], 1 }
 0x4bf   :  { %3073 = vsyncpa [#allocation12], 1 }

</bundles_post_ra>
